<compile_context>
chip_gen: v7x
topology: tpu7x:2x2x1
jax: 0.10.0
libtpu: 0.0.40
codegen_flags: <defaults>
</compile_context>

<pallas_src>
import jax
import jax.numpy as jnp
from jax.experimental import pallas as pl
from jax.experimental.pallas import tpu as pltpu

USE_CURRENTS = True
USE_MAGNETIC = True
USE_PROFILES = True
NIN = int(USE_CURRENTS) * 19 + int(USE_PROFILES) * 38 + int(USE_MAGNETIC) * 38  # 95
PHYSICS_LS = 64
NLCFS = 129
NOUT = NLCFS * 2                      # 258


def _round_up(n, m):
    return ((n + m - 1) // m) * m


def _lcfsnet_kernel(betas_ref,                       # SMEM (6,) f32
                    x_ref,                           # VMEM (TILE_B, NIN)
                    w1_ref, b1_ref, w2_ref, b2_ref, w3_ref, b3_ref,
                    w4_ref, b4_ref, w5_ref, b5_ref, w6_ref, b6_ref,
                    out_ref):                        # VMEM (TILE_B, NOUT)
    def layer(h, w_ref, b_ref, i):
        # MXU matmul in the weight dtype (bf16 on v6e/v7x), f32 accumulation.
        y = jnp.dot(h.astype(w_ref.dtype), w_ref[...],
                    preferred_element_type=jnp.float32) + b_ref[...]
        beta = betas_ref[i]
        # swish-beta: y*sigmoid(beta*y) == y*0.5*(1+tanh(0.5*beta*y)).
        # One EUP tanh per element instead of exp + reciprocal (halves EUP load).
        t = jnp.tanh(y * (0.5 * beta))
        return y * (0.5 * (1.0 + t))

    # InputNet (normalization already folded into w1/b1 by the wrapper)
    h = layer(x_ref[...], w1_ref, b1_ref, 0)
    h = layer(h, w2_ref, b2_ref, 1)
    ph = layer(h, w3_ref, b3_ref, 2)
    # LCFSHead
    h = layer(ph, w4_ref, b4_ref, 3)
    h = layer(h, w5_ref, b5_ref, 4)
    out_ref[...] = layer(h, w6_ref, b6_ref, 5).astype(out_ref.dtype)


def lcfsnet_forward(x, params, *, tile_b=2048, matmul_dtype=jnp.bfloat16):
    """x: (B, NIN) f32. params: dict with weights/biases/betas/mean/std."""
    assert x.ndim == 2 and x.shape[1] == NIN, x.shape
    B = x.shape[0]

    # --- fold input normalization into layer 1 (exact) ---
    inv_std = 1.0 / params["std"]
    w1 = params["w1"] * inv_std[:, None]
    b1 = params["b1"] - (params["mean"] * inv_std) @ params["w1"]

    def W(w):     # matmul operand dtype (bf16 on v6e/v7x MXU)
        return w.astype(matmul_dtype)

    def Bvec(b):  # biases stay f32, added after f32 accumulation
        return b.reshape(1, -1).astype(jnp.float32)

    weight_args = (
        W(w1), Bvec(b1),
        W(params["w2"]), Bvec(params["b2"]),
        W(params["w3"]), Bvec(params["b3"]),
        W(params["w4"]), Bvec(params["b4"]),
        W(params["w5"]), Bvec(params["b5"]),
        W(params["w6"]), Bvec(params["b6"]),
    )

    # --- batch tiling (sublane multiple of 8; pad batch to a tile multiple) ---
    tile_b = min(tile_b, _round_up(B, 8))
    tile_b = _round_up(tile_b, 8)
    b_pad = _round_up(B, tile_b)
    if b_pad != B:
        x = jnp.pad(x, ((0, b_pad - B), (0, 0)))
    grid = (b_pad // tile_b,)

    # Weights/biases: whole arrays pinned in VMEM for the lifetime of the call
    # (single DMA, no per-step pipelining of constants).
    weight_specs = [pl.BlockSpec(memory_space=pltpu.MemorySpace.VMEM)
                    for _ in weight_args]
    in_specs = (
        [pl.BlockSpec(memory_space=pltpu.MemorySpace.SMEM)]      # betas (6,)
        + [pl.BlockSpec((tile_b, NIN), lambda i: (i, 0))]        # x tile
        + weight_specs
    )
    # Native 258-wide output block (== full array dim) -> no column padding,
    # no wrapper-side column-slice copy, minimal HBM writeback.
    out_spec = pl.BlockSpec((tile_b, NOUT), lambda i: (i, 0))

    out = pl.pallas_call(
        _lcfsnet_kernel,
        grid=grid,
        out_shape=jax.ShapeDtypeStruct((b_pad, NOUT), jnp.float32),
        in_specs=in_specs,
        out_specs=out_spec,
        compiler_params=pltpu.CompilerParams(
            dimension_semantics=("parallel",),       # megacore on v7x
            vmem_limit_bytes=32 * 1024 * 1024,       # safe on v5e/v6e/v7x
        ),
    )(params["betas"], x, *weight_args)

    if b_pad != B:
        out = out[:B]
    return out


def init_params(key):
    """Deterministic synthetic parameters (shapes match the PyTorch module)."""
    keys = jax.random.split(key, 12)

    def lin(kw, kb, fan_in, fan_out):
        # PyTorch Linear stores W as (out, in); we pre-transpose to (in, out).
        lim = 1.0 / jnp.sqrt(fan_in)
        w = jax.random.uniform(kw, (fan_in, fan_out), jnp.float32, -lim, lim)
        b = jax.random.uniform(kb, (fan_out,), jnp.float32, -lim, lim)
        return w, b

    w1, b1 = lin(keys[0], keys[1], NIN, 64)
    w2, b2 = lin(keys[2], keys[3], 64, 64)
    w3, b3 = lin(keys[4], keys[5], 64, PHYSICS_LS)
    w4, b4 = lin(keys[6], keys[7], PHYSICS_LS, 32)
    w5, b5 = lin(keys[8], keys[9], 32, 32)
    w6, b6 = lin(keys[10], keys[11], 32, NOUT)

    return dict(
        w1=w1, b1=b1, w2=w2, b2=b2, w3=w3, b3=b3,
        w4=w4, b4=b4, w5=w5, b5=b5, w6=w6, b6=b6,
        betas=jnp.ones((6,), jnp.float32),            # ActF beta init = 1.0
        mean=jnp.zeros((NIN,), jnp.float32),          # InputNet default
        std=jnp.ones((NIN,), jnp.float32),
    )


def reference_forward(x, p):
    def act(h, beta):
        return h * jax.nn.sigmoid(beta * h)
    h = (x - p["mean"]) / p["std"]
    h = act(h @ p["w1"] + p["b1"], p["betas"][0])
    h = act(h @ p["w2"] + p["b2"], p["betas"][1])
    h = act(h @ p["w3"] + p["b3"], p["betas"][2])
    h = act(h @ p["w4"] + p["b4"], p["betas"][3])
    h = act(h @ p["w5"] + p["b5"], p["betas"][4])
    h = act(h @ p["w6"] + p["b6"], p["betas"][5])
    return h


if __name__ == "__main__":
    key = jax.random.PRNGKey(0)
    k_params, k_x = jax.random.split(key)
    params = init_params(k_params)

    # Small, non-tile-multiple batch: exercises the batch grid (3 tiles of 128)
    # and the row pad/slice path.
    B = 300
    x = jax.random.normal(k_x, (B, NIN), jnp.float32)

    ref = reference_forward(x, params)

    # f32 MXU-operand path: only differences vs reference are MXU f32-matmul
    # decomposition and the hardware tanh in the swish sigmoid.
    out_f32 = jax.block_until_ready(
        lcfsnet_forward(x, params, tile_b=128, matmul_dtype=jnp.float32))
    assert out_f32.shape == (B, NOUT), out_f32.shape
    assert jnp.allclose(out_f32, ref, atol=1e-3, rtol=1e-3), \
        float(jnp.max(jnp.abs(out_f32 - ref)))

    # bf16 MXU-operand path (default; v6e/v7x fast path) — bf16 rounding of
    # matmul operands widens the tolerance.
    out_bf16 = jax.block_until_ready(lcfsnet_forward(x, params, tile_b=128))
    assert out_bf16.shape == (B, NOUT), out_bf16.shape
    assert jnp.allclose(out_bf16, ref, atol=5e-2, rtol=5e-2), \
        float(jnp.max(jnp.abs(out_bf16 - ref)))

    print("KERNEL_OK")
</pallas_src>

<mosaic_0001>
module attributes {stable_mosaic.version = 11 : i64} {
  func.func @_lcfsnet_kernel(%arg0: i32, %arg1: memref<6xf32, #tpu.memory_space<smem>>, %arg2: memref<128x95xf32, #tpu.memory_space<vmem>>, %arg3: memref<95x64xf32, #tpu.memory_space<vmem>>, %arg4: memref<1x64xf32, #tpu.memory_space<vmem>>, %arg5: memref<64x64xf32, #tpu.memory_space<vmem>>, %arg6: memref<1x64xf32, #tpu.memory_space<vmem>>, %arg7: memref<64x64xf32, #tpu.memory_space<vmem>>, %arg8: memref<1x64xf32, #tpu.memory_space<vmem>>, %arg9: memref<64x32xf32, #tpu.memory_space<vmem>>, %arg10: memref<1x32xf32, #tpu.memory_space<vmem>>, %arg11: memref<32x32xf32, #tpu.memory_space<vmem>>, %arg12: memref<1x32xf32, #tpu.memory_space<vmem>>, %arg13: memref<32x258xf32, #tpu.memory_space<vmem>>, %arg14: memref<1x258xf32, #tpu.memory_space<vmem>>, %arg15: memref<128x258xf32, #tpu.memory_space<vmem>>) attributes {dimension_semantics = [#tpu.dimension_semantics<parallel>], iteration_bounds = array<i64: 3>, scalar_prefetch = 0 : i64, scratch_operands = 0 : i64, tpu.core_type = #tpu.core_type<tc>, window_params = [{transform_indices = @transform_0, window_bounds = array<i64: 6>}, {transform_indices = @transform_1, window_bounds = array<i64: 128, 95>}, {pipeline_mode = #tpu.pipeline_mode<synchronous>, transform_indices = @transform_2, window_bounds = array<i64: 95, 64>}, {pipeline_mode = #tpu.pipeline_mode<synchronous>, transform_indices = @transform_3, window_bounds = array<i64: 1, 64>}, {pipeline_mode = #tpu.pipeline_mode<synchronous>, transform_indices = @transform_4, window_bounds = array<i64: 64, 64>}, {pipeline_mode = #tpu.pipeline_mode<synchronous>, transform_indices = @transform_5, window_bounds = array<i64: 1, 64>}, {pipeline_mode = #tpu.pipeline_mode<synchronous>, transform_indices = @transform_6, window_bounds = array<i64: 64, 64>}, {pipeline_mode = #tpu.pipeline_mode<synchronous>, transform_indices = @transform_7, window_bounds = array<i64: 1, 64>}, {pipeline_mode = #tpu.pipeline_mode<synchronous>, transform_indices = @transform_8, window_bounds = array<i64: 64, 32>}, {pipeline_mode = #tpu.pipeline_mode<synchronous>, transform_indices = @transform_9, window_bounds = array<i64: 1, 32>}, {pipeline_mode = #tpu.pipeline_mode<synchronous>, transform_indices = @transform_10, window_bounds = array<i64: 32, 32>}, {pipeline_mode = #tpu.pipeline_mode<synchronous>, transform_indices = @transform_11, window_bounds = array<i64: 1, 32>}, {pipeline_mode = #tpu.pipeline_mode<synchronous>, transform_indices = @transform_12, window_bounds = array<i64: 32, 258>}, {pipeline_mode = #tpu.pipeline_mode<synchronous>, transform_indices = @transform_13, window_bounds = array<i64: 1, 258>}, {transform_indices = @transform_14, window_bounds = array<i64: 128, 258>}]} {
    %c0 = arith.constant 0 : index
    %c0_0 = arith.constant 0 : index
    %0 = vector.load %arg2[%c0, %c0_0] : memref<128x95xf32, #tpu.memory_space<vmem>>, vector<128x95xf32>
    %c0_1 = arith.constant 0 : index
    %c0_2 = arith.constant 0 : index
    %1 = vector.load %arg3[%c0_1, %c0_2] : memref<95x64xf32, #tpu.memory_space<vmem>>, vector<95x64xf32>
    %cst = arith.constant dense<0.000000e+00> : vector<128x64xf32>
    %2 = tpu.matmul %0, %1, %cst {dimension_numbers = #tpu.dot_dimension_numbers<[1], [0], [0], [1], [0, 0, 1, 1], [], []>} : vector<128x95xf32>, vector<95x64xf32>, vector<128x64xf32> -> vector<128x64xf32>
    %c0_3 = arith.constant 0 : index
    %c0_4 = arith.constant 0 : index
    %3 = vector.load %arg4[%c0_3, %c0_4] : memref<1x64xf32, #tpu.memory_space<vmem>>, vector<1x64xf32>
    %4 = vector.broadcast %3 : vector<1x64xf32> to vector<128x64xf32>
    %5 = arith.addf %2, %4 : vector<128x64xf32>
    %c0_5 = arith.constant 0 : index
    %6 = memref.load %arg1[%c0_5] : memref<6xf32, #tpu.memory_space<smem>>
    %cst_6 = arith.constant 5.000000e-01 : f32
    %7 = arith.mulf %cst_6, %6 : f32
    %8 = vector.broadcast %7 : f32 to vector<128x64xf32>
    %9 = arith.mulf %5, %8 : vector<128x64xf32>
    %10 = math.tanh %9 : vector<128x64xf32>
    %cst_7 = arith.constant 1.000000e+00 : f32
    %11 = vector.broadcast %cst_7 : f32 to vector<128x64xf32>
    %12 = arith.addf %11, %10 : vector<128x64xf32>
    %cst_8 = arith.constant 5.000000e-01 : f32
    %13 = vector.broadcast %cst_8 : f32 to vector<128x64xf32>
    %14 = arith.mulf %13, %12 : vector<128x64xf32>
    %15 = arith.mulf %5, %14 : vector<128x64xf32>
    %c0_9 = arith.constant 0 : index
    %c0_10 = arith.constant 0 : index
    %16 = vector.load %arg5[%c0_9, %c0_10] : memref<64x64xf32, #tpu.memory_space<vmem>>, vector<64x64xf32>
    %cst_11 = arith.constant dense<0.000000e+00> : vector<128x64xf32>
    %17 = tpu.matmul %15, %16, %cst_11 {dimension_numbers = #tpu.dot_dimension_numbers<[1], [0], [0], [1], [0, 0, 1, 1], [], []>} : vector<128x64xf32>, vector<64x64xf32>, vector<128x64xf32> -> vector<128x64xf32>
    %c0_12 = arith.constant 0 : index
    %c0_13 = arith.constant 0 : index
    %18 = vector.load %arg6[%c0_12, %c0_13] : memref<1x64xf32, #tpu.memory_space<vmem>>, vector<1x64xf32>
    %19 = vector.broadcast %18 : vector<1x64xf32> to vector<128x64xf32>
    %20 = arith.addf %17, %19 : vector<128x64xf32>
    %c1 = arith.constant 1 : index
    %21 = memref.load %arg1[%c1] : memref<6xf32, #tpu.memory_space<smem>>
    %cst_14 = arith.constant 5.000000e-01 : f32
    %22 = arith.mulf %cst_14, %21 : f32
    %23 = vector.broadcast %22 : f32 to vector<128x64xf32>
    %24 = arith.mulf %20, %23 : vector<128x64xf32>
    %25 = math.tanh %24 : vector<128x64xf32>
    %cst_15 = arith.constant 1.000000e+00 : f32
    %26 = vector.broadcast %cst_15 : f32 to vector<128x64xf32>
    %27 = arith.addf %26, %25 : vector<128x64xf32>
    %cst_16 = arith.constant 5.000000e-01 : f32
    %28 = vector.broadcast %cst_16 : f32 to vector<128x64xf32>
    %29 = arith.mulf %28, %27 : vector<128x64xf32>
    %30 = arith.mulf %20, %29 : vector<128x64xf32>
    %c0_17 = arith.constant 0 : index
    %c0_18 = arith.constant 0 : index
    %31 = vector.load %arg7[%c0_17, %c0_18] : memref<64x64xf32, #tpu.memory_space<vmem>>, vector<64x64xf32>
    %cst_19 = arith.constant dense<0.000000e+00> : vector<128x64xf32>
    %32 = tpu.matmul %30, %31, %cst_19 {dimension_numbers = #tpu.dot_dimension_numbers<[1], [0], [0], [1], [0, 0, 1, 1], [], []>} : vector<128x64xf32>, vector<64x64xf32>, vector<128x64xf32> -> vector<128x64xf32>
    %c0_20 = arith.constant 0 : index
    %c0_21 = arith.constant 0 : index
    %33 = vector.load %arg8[%c0_20, %c0_21] : memref<1x64xf32, #tpu.memory_space<vmem>>, vector<1x64xf32>
    %34 = vector.broadcast %33 : vector<1x64xf32> to vector<128x64xf32>
    %35 = arith.addf %32, %34 : vector<128x64xf32>
    %c2 = arith.constant 2 : index
    %36 = memref.load %arg1[%c2] : memref<6xf32, #tpu.memory_space<smem>>
    %cst_22 = arith.constant 5.000000e-01 : f32
    %37 = arith.mulf %cst_22, %36 : f32
    %38 = vector.broadcast %37 : f32 to vector<128x64xf32>
    %39 = arith.mulf %35, %38 : vector<128x64xf32>
    %40 = math.tanh %39 : vector<128x64xf32>
    %cst_23 = arith.constant 1.000000e+00 : f32
    %41 = vector.broadcast %cst_23 : f32 to vector<128x64xf32>
    %42 = arith.addf %41, %40 : vector<128x64xf32>
    %cst_24 = arith.constant 5.000000e-01 : f32
    %43 = vector.broadcast %cst_24 : f32 to vector<128x64xf32>
    %44 = arith.mulf %43, %42 : vector<128x64xf32>
    %45 = arith.mulf %35, %44 : vector<128x64xf32>
    %c0_25 = arith.constant 0 : index
    %c0_26 = arith.constant 0 : index
    %46 = vector.load %arg9[%c0_25, %c0_26] : memref<64x32xf32, #tpu.memory_space<vmem>>, vector<64x32xf32>
    %cst_27 = arith.constant dense<0.000000e+00> : vector<128x32xf32>
    %47 = tpu.matmul %45, %46, %cst_27 {dimension_numbers = #tpu.dot_dimension_numbers<[1], [0], [0], [1], [0, 0, 1, 1], [], []>} : vector<128x64xf32>, vector<64x32xf32>, vector<128x32xf32> -> vector<128x32xf32>
    %c0_28 = arith.constant 0 : index
    %c0_29 = arith.constant 0 : index
    %48 = vector.load %arg10[%c0_28, %c0_29] : memref<1x32xf32, #tpu.memory_space<vmem>>, vector<1x32xf32>
    %49 = vector.broadcast %48 : vector<1x32xf32> to vector<128x32xf32>
    %50 = arith.addf %47, %49 : vector<128x32xf32>
    %c3 = arith.constant 3 : index
    %51 = memref.load %arg1[%c3] : memref<6xf32, #tpu.memory_space<smem>>
    %cst_30 = arith.constant 5.000000e-01 : f32
    %52 = arith.mulf %cst_30, %51 : f32
    %53 = vector.broadcast %52 : f32 to vector<128x32xf32>
    %54 = arith.mulf %50, %53 : vector<128x32xf32>
    %55 = math.tanh %54 : vector<128x32xf32>
    %cst_31 = arith.constant 1.000000e+00 : f32
    %56 = vector.broadcast %cst_31 : f32 to vector<128x32xf32>
    %57 = arith.addf %56, %55 : vector<128x32xf32>
    %cst_32 = arith.constant 5.000000e-01 : f32
    %58 = vector.broadcast %cst_32 : f32 to vector<128x32xf32>
    %59 = arith.mulf %58, %57 : vector<128x32xf32>
    %60 = arith.mulf %50, %59 : vector<128x32xf32>
    %c0_33 = arith.constant 0 : index
    %c0_34 = arith.constant 0 : index
    %61 = vector.load %arg11[%c0_33, %c0_34] : memref<32x32xf32, #tpu.memory_space<vmem>>, vector<32x32xf32>
    %cst_35 = arith.constant dense<0.000000e+00> : vector<128x32xf32>
    %62 = tpu.matmul %60, %61, %cst_35 {dimension_numbers = #tpu.dot_dimension_numbers<[1], [0], [0], [1], [0, 0, 1, 1], [], []>} : vector<128x32xf32>, vector<32x32xf32>, vector<128x32xf32> -> vector<128x32xf32>
    %c0_36 = arith.constant 0 : index
    %c0_37 = arith.constant 0 : index
    %63 = vector.load %arg12[%c0_36, %c0_37] : memref<1x32xf32, #tpu.memory_space<vmem>>, vector<1x32xf32>
    %64 = vector.broadcast %63 : vector<1x32xf32> to vector<128x32xf32>
    %65 = arith.addf %62, %64 : vector<128x32xf32>
    %c4 = arith.constant 4 : index
    %66 = memref.load %arg1[%c4] : memref<6xf32, #tpu.memory_space<smem>>
    %cst_38 = arith.constant 5.000000e-01 : f32
    %67 = arith.mulf %cst_38, %66 : f32
    %68 = vector.broadcast %67 : f32 to vector<128x32xf32>
    %69 = arith.mulf %65, %68 : vector<128x32xf32>
    %70 = math.tanh %69 : vector<128x32xf32>
    %cst_39 = arith.constant 1.000000e+00 : f32
    %71 = vector.broadcast %cst_39 : f32 to vector<128x32xf32>
    %72 = arith.addf %71, %70 : vector<128x32xf32>
    %cst_40 = arith.constant 5.000000e-01 : f32
    %73 = vector.broadcast %cst_40 : f32 to vector<128x32xf32>
    %74 = arith.mulf %73, %72 : vector<128x32xf32>
    %75 = arith.mulf %65, %74 : vector<128x32xf32>
    %c0_41 = arith.constant 0 : index
    %c0_42 = arith.constant 0 : index
    %76 = vector.load %arg13[%c0_41, %c0_42] : memref<32x258xf32, #tpu.memory_space<vmem>>, vector<32x258xf32>
    %cst_43 = arith.constant dense<0.000000e+00> : vector<128x258xf32>
    %77 = tpu.matmul %75, %76, %cst_43 {dimension_numbers = #tpu.dot_dimension_numbers<[1], [0], [0], [1], [0, 0, 1, 1], [], []>} : vector<128x32xf32>, vector<32x258xf32>, vector<128x258xf32> -> vector<128x258xf32>
    %c0_44 = arith.constant 0 : index
    %c0_45 = arith.constant 0 : index
    %78 = vector.load %arg14[%c0_44, %c0_45] : memref<1x258xf32, #tpu.memory_space<vmem>>, vector<1x258xf32>
    %79 = vector.broadcast %78 : vector<1x258xf32> to vector<128x258xf32>
    %80 = arith.addf %77, %79 : vector<128x258xf32>
    %c5 = arith.constant 5 : index
    %81 = memref.load %arg1[%c5] : memref<6xf32, #tpu.memory_space<smem>>
    %cst_46 = arith.constant 5.000000e-01 : f32
    %82 = arith.mulf %cst_46, %81 : f32
    %83 = vector.broadcast %82 : f32 to vector<128x258xf32>
    %84 = arith.mulf %80, %83 : vector<128x258xf32>
    %85 = math.tanh %84 : vector<128x258xf32>
    %cst_47 = arith.constant 1.000000e+00 : f32
    %86 = vector.broadcast %cst_47 : f32 to vector<128x258xf32>
    %87 = arith.addf %86, %85 : vector<128x258xf32>
    %cst_48 = arith.constant 5.000000e-01 : f32
    %88 = vector.broadcast %cst_48 : f32 to vector<128x258xf32>
    %89 = arith.mulf %88, %87 : vector<128x258xf32>
    %90 = arith.mulf %80, %89 : vector<128x258xf32>
    %c0_49 = arith.constant 0 : index
    %c0_50 = arith.constant 0 : index
    %91 = vector.load %arg15[%c0_49, %c0_50] : memref<128x258xf32, #tpu.memory_space<vmem>>, vector<128x258xf32>
    tpu.vector_store %arg15[%c0_49, %c0_50], %90 {strides = array<i32>} : memref<128x258xf32, #tpu.memory_space<vmem>>, vector<128x258xf32>,
    return
  }
  func.func @transform_0(%arg0: i32) -> i32 {
    %c0_i32 = arith.constant 0 : i32
    %c0_i32_0 = arith.constant 0 : i32
    return %c0_i32 : i32
  }
  func.func @transform_1(%arg0: i32) -> (i32, i32) {
    %c0_i32 = arith.constant 0 : i32
    %c0_i32_0 = arith.constant 0 : i32
    return %arg0, %c0_i32 : i32, i32
  }
  func.func @transform_2(%arg0: i32) -> (i32, i32) {
    %c0_i32 = arith.constant 0 : i32
    %c0_i32_0 = arith.constant 0 : i32
    %c0_i32_1 = arith.constant 0 : i32
    return %c0_i32, %c0_i32_0 : i32, i32
  }
  func.func @transform_3(%arg0: i32) -> (i32, i32) {
    %c0_i32 = arith.constant 0 : i32
    %c0_i32_0 = arith.constant 0 : i32
    %c0_i32_1 = arith.constant 0 : i32
    return %c0_i32, %c0_i32_0 : i32, i32
  }
  func.func @transform_4(%arg0: i32) -> (i32, i32) {
    %c0_i32 = arith.constant 0 : i32
    %c0_i32_0 = arith.constant 0 : i32
    %c0_i32_1 = arith.constant 0 : i32
    return %c0_i32, %c0_i32_0 : i32, i32
  }
  func.func @transform_5(%arg0: i32) -> (i32, i32) {
    %c0_i32 = arith.constant 0 : i32
    %c0_i32_0 = arith.constant 0 : i32
    %c0_i32_1 = arith.constant 0 : i32
    return %c0_i32, %c0_i32_0 : i32, i32
  }
  func.func @transform_6(%arg0: i32) -> (i32, i32) {
    %c0_i32 = arith.constant 0 : i32
    %c0_i32_0 = arith.constant 0 : i32
    %c0_i32_1 = arith.constant 0 : i32
    return %c0_i32, %c0_i32_0 : i32, i32
  }
  func.func @transform_7(%arg0: i32) -> (i32, i32) {
    %c0_i32 = arith.constant 0 : i32
    %c0_i32_0 = arith.constant 0 : i32
    %c0_i32_1 = arith.constant 0 : i32
    return %c0_i32, %c0_i32_0 : i32, i32
  }
  func.func @transform_8(%arg0: i32) -> (i32, i32) {
    %c0_i32 = arith.constant 0 : i32
    %c0_i32_0 = arith.constant 0 : i32
    %c0_i32_1 = arith.constant 0 : i32
    return %c0_i32, %c0_i32_0 : i32, i32
  }
  func.func @transform_9(%arg0: i32) -> (i32, i32) {
    %c0_i32 = arith.constant 0 : i32
    %c0_i32_0 = arith.constant 0 : i32
    %c0_i32_1 = arith.constant 0 : i32
    return %c0_i32, %c0_i32_0 : i32, i32
  }
  func.func @transform_10(%arg0: i32) -> (i32, i32) {
    %c0_i32 = arith.constant 0 : i32
    %c0_i32_0 = arith.constant 0 : i32
    %c0_i32_1 = arith.constant 0 : i32
    return %c0_i32, %c0_i32_0 : i32, i32
  }
  func.func @transform_11(%arg0: i32) -> (i32, i32) {
    %c0_i32 = arith.constant 0 : i32
    %c0_i32_0 = arith.constant 0 : i32
    %c0_i32_1 = arith.constant 0 : i32
    return %c0_i32, %c0_i32_0 : i32, i32
  }
  func.func @transform_12(%arg0: i32) -> (i32, i32) {
    %c0_i32 = arith.constant 0 : i32
    %c0_i32_0 = arith.constant 0 : i32
    %c0_i32_1 = arith.constant 0 : i32
    return %c0_i32, %c0_i32_0 : i32, i32
  }
  func.func @transform_13(%arg0: i32) -> (i32, i32) {
    %c0_i32 = arith.constant 0 : i32
    %c0_i32_0 = arith.constant 0 : i32
    %c0_i32_1 = arith.constant 0 : i32
    return %c0_i32, %c0_i32_0 : i32, i32
  }
  func.func @transform_14(%arg0: i32) -> (i32, i32) {
    %c0_i32 = arith.constant 0 : i32
    %c0_i32_0 = arith.constant 0 : i32
    return %arg0, %c0_i32 : i32, i32
  }
}

</mosaic_0001>

<bundles_post_ra>
// kernel: tpu_custom_call.1
= control target key start
LH: loop header
LB: loop body
LE: loop exit
PB: predicated region body
PF: predicated region fallthrough
CT: control target
= control target key end

     0   :  { %19 = vsyncpa [#allocation3], 0  ;;  %s3699_s29 = smov 0   ;;  %s4847_s0 = inlined_call_operand.vmem [shape: f32[6], index: 0, kind: input, shape index: {}]   ;;  %s4848_s1 = inlined_call_operand.vmem [shape: f32[384,95], index: 1, kind: input, shape index: {}]   ;;  %s4849_s2 = inlined_call_operand.vmem [shape: f32[95,64], index: 2, kind: input, shape index: {}]   ;;  %s4850_s3 = inlined_call_operand.vmem [shape: f32[1,64], index: 3, kind: input, shape index: {}]   ;;  %s4851_s4 = inlined_call_operand.vmem [shape: f32[64,64], index: 4, kind: input, shape index: {}]   ;;  %s4852_s5 = inlined_call_operand.vmem [shape: f32[1,64], index: 5, kind: input, shape index: {}]   ;;  %s4853_s6 = inlined_call_operand.vmem [shape: f32[64,64], index: 6, kind: input, shape index: {}]   ;;  %s4854_s7 = inlined_call_operand.vmem [shape: f32[1,64], index: 7, kind: input, shape index: {}]   ;;  %s4855_s8 = inlined_call_operand.vmem [shape: f32[64,32], index: 8, kind: input, shape index: {}]   ;;  %s4856_s9 = inlined_call_operand.vmem [shape: f32[1,32], index: 9, kind: input, shape index: {}]   ;;  %s4857_s10 = inlined_call_operand.vmem [shape: f32[32,32], index: 10, kind: input, shape index: {}]   ;;  %s4858_s11 = inlined_call_operand.vmem [shape: f32[1,32], index: 11, kind: input, shape index: {}]   ;;  %s4859_s12 = inlined_call_operand.vmem [shape: f32[32,258], index: 12, kind: input, shape index: {}]   ;;  %s4860_s13 = inlined_call_operand.vmem [shape: f32[1,258], index: 13, kind: input, shape index: {}]   ;;  %s4861_s14 = inlined_call_operand.vmem [shape: f32[384,258], index: 14, kind: output, shape index: {}]  }
   0x1 LB: > { %s2710_s30 = sadd.s32 4294967295, %s3619_s29   ;;  %p2712_p0 = scmp.ge.s32.totalorder %s3619_s29, 1  ;;  %s3619_s29 = sphi %s3699_s29, %s25_s29  }
   0x2   : > { %p355_p1 = scmp.lt.s32.totalorder %s3619_s29, 4  ;;  %s368_s17 = sshll.u32 %s4847_s0, 4  ;;  %s369_s17 = int_to_ptr.vmem [resolvable:$true] %s368_s17 }
   0x3   : > { %p3714_p3 = scmp.eq.s32.totalorder %s2710_s30, 0  ;;  %s3594_s20 = scalar_lea.vmem %s369_s17, 16 }
   0x4   : > { %p3710_p2 = pnand %p2712_p0, %p355_p1  ;;  %p3595_p6 = scmp.ne.s32.totalorder %s369_s17, %s3594_s20 }
   0x5   : > { %p3602_p10 = scmp.lt.s32.totalorder %s369_s17, %s369_s17  ;;  %p3603_p11 = scmp.lt.s32.totalorder %s3594_s20, %s3594_s20 }
   0x6   : > { %p3321_p4 = pneg %p3710_p2 }
   0x7   : > { %p3604_p12 = por %p3603_p11, %p3602_p10 }
   0x8   : > { %p3322_p5 = pnand %p3714_p3, %p3321_p4 }
   0xa   : > { %p3596_p7 = pneg %p3322_p5 }
   0xc   : > { %p3597_p8 = pnand %p3596_p7, %p3595_p6 }
   0xe   : > { %p3598_p9 = pneg %p3597_p8 }
  0x10   : > { %p3605_p13 = pnand %p3604_p12, %p3598_p9 }
  0x12   : > { %3608 = shalt.err (!%p3605_p13)
}
  0x13   : > { %s3621_s21 = smov [#allocation2]   ;;  %426 = sbr.rel (%p3710_p2) target bundleno = 1531 (0x5fb), region = 76 }
  0x14   : > { %3324 = dma.vmem_to_smem (!%p3322_p5), %s369_s17, 16, %s3621_s21, [#allocation3]  }
  0x1a   : > { %3614 = dma.done.wait (%p3714_p3), [#allocation3], 16  }
  0x1b   : > { %3616 = vsyncadd (%p3714_p3), [#allocation3], 4294967280 }
  0x1c   : > { %432 = sfence }
  0x1d   : > { %v503_v0 = vld [vmem:[%s4849_s2] sm:$0xff]  ;;  %v504_v1 = vld [vmem:[%s4849_s2 + $0x8] sm:$0xff]  ;;  %v505_v2 = vld [vmem:[%s4849_s2 + $0x10] sm:$0xff]  ;;  %s2717_s28 = sshll.u32 %s2710_s30, 4  ;;  %vm522_vm0 = vcmask 777216   ;;  %vm571_vm1 = vcmask 1046528  }
  0x1e   : > { %v3218_v3 = vpack.c.bf16 %v504_v1, %v503_v0  ;;  %v506_v4 = vld [vmem:[%s4849_s2 + $0x18] sm:$0xff]  ;;  %p475_p0 = scmp.lt.s32.totalorder %s2717_s28, 47  ;;  %v507_v6 = vld [vmem:[%s4849_s2 + $0x20] sm:$0xff]  ;;  %v508_v7 = vld [vmem:[%s4849_s2 + $0x28] sm:$0xff]  ;;  %vm3622_vm2 = vmmov 1   ;;  %s720_s16 = sld [smem:[#allocation2]] }
  0x1f   : > { %v3222_v5 = vpack.c.bf16 %v506_v4, %v505_v2  ;;  %v3226_v8 = vpack.c.bf16 %v508_v7, %v507_v6  ;;  %v509_v9 = vld [vmem:[%s4849_s2 + $0x30] sm:$0xff]  ;;  %v510_v10 = vld [vmem:[%s4849_s2 + $0x38] sm:$0xff]  ;;  %v511_v13 = vld [vmem:[%s4849_s2 + $0x40] sm:$0xff]  ;;  %vm818_vm4 = vcmask 523264   ;;  %s2756_s24 = sld [smem:[#allocation2 + $0x1]]  ;;  %s2774_s26 = sld [smem:[#allocation2 + $0x2]] }
  0x20   : > { %3219 = vmatprep.subr.bf16.mxu0 %v3218_v3  ;;  %s4865_s28 = smov (!%p475_p0, %s2717_s28), 47  ;;  %v3230_v12 = vpack.c.bf16 %v510_v10, %v509_v9  ;;  %v512_v14 = vld [vmem:[%s4849_s2 + $0x48] sm:$0xff]  ;;  %v513_v16 = vld [vmem:[%s4849_s2 + $0x50] sm:$0xff]  ;;  %v514_v17 = vld [vmem:[%s4849_s2 + $0x58] sm:$0x7f]  ;;  %vm1688_vm5 = vcmask 261120  }
  0x21   : > { %3221 = vmatpush3.bf16.msra.mxu0 %v3218_v3  ;;  %s2718_s30 = sshll.u32 %s4865_s28, 3  ;;  %v3234_v15 = vpack.c.bf16 %v512_v14, %v511_v13  ;;  %v3238_v18 = vpack.c.bf16 %v514_v17, %v513_v16  ;;  %vm3239_vm3 = vmpackc.low %vm571_vm1, %vm3622_vm2  ;;  %v803_v34 = vld [vmem:[%s4851_s4] sm:$0xff]  ;;  %v804_v35 = vld [vmem:[%s4851_s4 + $0x8] sm:$0xff]  ;;  %vm2593_vm6 = vcmask 15360  }
  0x22   : > { %3223 = vmatprep.subr.bf16.mxu0 %v3222_v5  ;;  %s3758_s27 = scalar_lea.vmem %s4848_s1, %s2718_s30  ;;  %v3244_v36 = vpack.c.bf16 %v804_v35, %v803_v34  ;;  %v805_v37 = vld [vmem:[%s4851_s4 + $0x10] sm:$0xff]  ;;  %v806_v38 = vld [vmem:[%s4851_s4 + $0x18] sm:$0xff]  ;;  %v807_v40 = vld [vmem:[%s4851_s4 + $0x20] sm:$0xff]  ;;  %s2810_s30 = sld [smem:[#allocation2 + $0x4]] }
  0x23   : > { %v487_v11 = vld [vmem:[%s3758_s27] sm:$0xff]  ;;  %v488_v19 = vld [vmem:[%s3758_s27 + $0x8] sm:$0xff]  ;;  %v489_v20 = vld [vmem:[%s3758_s27 + $0x10] sm:$0xff]  ;;  %v3248_v39 = vpack.c.bf16 %v806_v38, %v805_v37 }
  0x24   : > { %3010 = vmatprep.mubr.msk.f32.mxu0 %vm522_vm0, %v487_v11  ;;  %v490_v21 = vld [vmem:[%s3758_s27 + $0x18] sm:$0xff]  ;;  %v491_v22 = vld [vmem:[%s3758_s27 + $0x20] sm:$0xff]  ;;  %v492_v23 = vld [vmem:[%s3758_s27 + $0x28] sm:$0xff]  ;;  %3245 = vmatprep.subr.bf16.mxu1 %v3244_v36  ;;  %s721_s17 = smul.f32 0.5, %s720_s16  ;;  %s2792_s16 = sld [smem:[#allocation2 + $0x3]] }
  0x25   : > { %3225 = vmatpush3.bf16.msra.mxu0 %v3222_v5  ;;  %v493_v24 = vld [vmem:[%s3758_s27 + $0x30] sm:$0xff]  ;;  %v494_v25 = vld [vmem:[%s3758_s27 + $0x38] sm:$0xff]  ;;  %v495_v26 = vld [vmem:[%s3758_s27 + $0x40] sm:$0xff]  ;;  %3247 = vmatpush3.bf16.msra.mxu1 %v3244_v36  ;;  %s1013_s25 = smul.f32 0.5, %s2756_s24  ;;  %s2843_s24 = sld [smem:[#allocation2 + $0x5]] }
  0x26   : > { %3227 = vmatprep.subr.bf16.mxu0 %v3226_v8  ;;  %v496_v27 = vld [vmem:[%s3758_s27 + $0x48] sm:$0xff]  ;;  %v497_v28 = vld [vmem:[%s3758_s27 + $0x50] sm:$0xff]  ;;  %v498_v29 = vld [vmem:[%s3758_s27 + $0x58] sm:$0xff]  ;;  %3249 = vmatprep.subr.bf16.mxu1 %v3248_v39  ;;  %v3842_v51 = vstv %s721_s17  ;;  %s1304_s15 = smul.f32 0.5, %s2774_s26 }
  0x27   : > { %v499_v30 = vld [vmem:[%s3758_s27 + $0x60] sm:$0xff]  ;;  %v500_v31 = vld [vmem:[%s3758_s27 + $0x68] sm:$0xff]  ;;  %v501_v32 = vld [vmem:[%s3758_s27 + $0x70] sm:$0xff] }
  0x28   : > { %v502_v33 = vld [vmem:[%s3758_s27 + $0x78] sm:$0xff]  ;;  %v808_v41 = vld [vmem:[%s4851_s4 + $0x28] sm:$0xff]  ;;  %v809_v43 = vld [vmem:[%s4851_s4 + $0x30] sm:$0xff]  ;;  %s1883_s21 = smul.f32 0.5, %s2810_s30 }
  0x29   : > { %3229 = vmatpush3.bf16.msra.mxu0 %v3226_v8  ;;  %3251 = vmatpush3.bf16.msra.mxu1 %v3248_v39  ;;  %v3252_v42 = vpack.c.bf16 %v808_v41, %v807_v40  ;;  %v810_v44 = vld [vmem:[%s4851_s4 + $0x38] sm:$0xff]  ;;  %v1095_v46 = vld [vmem:[%s4853_s6] sm:$0xff]  ;;  %v1096_v47 = vld [vmem:[%s4853_s6 + $0x8] sm:$0xff] }
  0x2a   : > { %3231 = vmatprep.subr.bf16.mxu0 %v3230_v12  ;;  %v3256_v45 = vpack.c.bf16 %v810_v44, %v809_v43  ;;  %v3834_v48 = vpack.c.bf16 %v1096_v47, %v1095_v46  ;;  %v3840_v49 = vld [vmem:[%s4850_s3] ss:$0 sm:$0xff]  ;;  %s1595_s17 = smul.f32 0.5, %s2792_s16 }
  0x2b   : > { %3253 = vmatprep.subr.bf16.mxu1 %v3252_v42  ;;  %s3316_s16 = smul.u32 24, %s4865_s28 }
  0x2d   : > { %3233 = vmatpush3.bf16.msra.mxu0 %v3230_v12  ;;  %3255 = vmatpush3.bf16.msra.mxu1 %v3252_v42  ;;  %s4544_s27 = scalar_lea.vmem %s4861_s14, %s3316_s16 }
  0x2e   : > { %3235 = vmatprep.subr.bf16.mxu0 %v3234_v15  ;;  %3257 = vmatprep.subr.bf16.mxu1 %v3256_v45 }
  0x31   : > { %3237 = vmatpush3.bf16.msra.mxu0 %v3234_v15  ;;  %3259 = vmatpush3.bf16.msra.mxu1 %v3256_v45 }
  0x32   : > { %3240 = vmatprep.subr.msk.bf16.mxu0 %vm3239_vm3, %v3238_v18  ;;  %3261 = vmatprep.subr.bf16.mxu1 %v3834_v48 }
  0x35   : > { %3243 = vmatpush3.bf16.msk.msra.mxu0 %vm3239_vm3, %v3238_v18  ;;  %v1097_v18 = vld [vmem:[%s4853_s6 + $0x10] sm:$0xff] }
  0x38   : > { %3011 = vmatmul.mubr.msk.f32.vlgmr.msra.gmra.mrb[0].mxu0 %vm522_vm0, %v488_v19  ;;  %v1098_v19 = vld [vmem:[%s4853_s6 + $0x18] sm:$0xff] }
  0x39   : > { %3013 = vmatprep.mubr.msk.f32.mxu0 %vm522_vm0, %v489_v20 }
  0x3c   : > { %3014 = vmatmul.mubr.msk.f32.gmra.mrb[2].mxu0 %vm522_vm0, %v490_v21 }
  0x3d   : > { %3016 = vmatprep.mubr.msk.f32.mxu0 %vm522_vm0, %v491_v22 }
  0x40   : > { %3017 = vmatmul.mubr.msk.f32.gmra.mrb[4].mxu0 %vm522_vm0, %v492_v23 }
  0x41   : > { %3019 = vmatprep.mubr.msk.f32.mxu0 %vm522_vm0, %v493_v24 }
  0x44   : > { %3020 = vmatmul.mubr.msk.f32.gmra.mrb[6].mxu0 %vm522_vm0, %v494_v25 }
  0x45   : > { %3022 = vmatprep.mubr.msk.f32.mxu0 %vm522_vm0, %v495_v26 }
  0x48   : > { %3023 = vmatmul.mubr.msk.f32.gmra.mrb[8].mxu0 %vm522_vm0, %v496_v27 }
  0x49   : > { %3025 = vmatprep.mubr.msk.f32.mxu0 %vm522_vm0, %v497_v28 }
  0x4c   : > { %3026 = vmatmul.mubr.msk.f32.gmra.mrb[10].mxu0 %vm522_vm0, %v498_v29  ;;  %v3264_v29 = vpack.c.bf16 %v1098_v19, %v1097_v18 }
  0x4d   : > { %3028 = vmatprep.mubr.msk.f32.mxu0 %vm522_vm0, %v499_v30 }
  0x50   : > { %3029 = vmatmul.mubr.msk.f32.gmra.mrb[12].mxu0 %vm522_vm0, %v500_v31 }
  0x51   : > { %3031 = vmatprep.mubr.msk.f32.mxu0 %vm522_vm0, %v501_v32 }
  0x54   : > { %3032 = vmatmul.mubr.msk.f32.gmra.mrb[14].mxu0 %vm522_vm0, %v502_v33 }
 0x10b   : > { %v3012_v50 = vpop.f32.mrb[0].mxu0 }
 0x10c   : > { %v647_v52 = vadd.f32 %v3012_v50, %v3840_v49  ;;  %v641_v53 = vpop.f32.mrb[1].mxu0 }
 0x10d   : > { %v642_v54 = vadd.f32 %v3840_v49, %v641_v53 }
 0x10e   : > { %v724_v55 = vmul.f32 %v3842_v51, %v647_v52 }
 0x10f   : > { %v723_v56 = vmul.f32 %v3842_v51, %v642_v54  ;;  %v3015_v57 = vpop.f32.mrb[2].mxu0 }
 0x110   : > { %3338 = vtanh.f32 %v724_v55  ;;  %v3849_v58 = vadd.f32 %v3015_v57, %v3840_v49  ;;  %v651_v59 = vpop.f32.mrb[3].mxu0 }
 0x111   : > { %3340 = vtanh.f32 %v723_v56  ;;  %v652_v60 = vadd.f32 %v3840_v49, %v651_v59 }
 0x112   : > { %v726_v61 = vmul.f32 %v3842_v51, %v3849_v58 }
 0x113   : > { %v725_v62 = vmul.f32 %v3842_v51, %v652_v60  ;;  %v3018_v63 = vpop.f32.mrb[4].mxu0 }
 0x114   : > { %3342 = vtanh.f32 %v726_v61  ;;  %v3856_v0 = vadd.f32 %v3018_v63, %v3840_v49  ;;  %v661_v1 = vpop.f32.mrb[5].mxu0 }
 0x115   : > { %3344 = vtanh.f32 %v725_v62  ;;  %v3859_v2 = vadd.f32 %v3840_v49, %v661_v1 }
 0x116   : > { %v728_v3 = vmul.f32 %v3842_v51, %v3856_v0 }
 0x117   : > { %v727_v4 = vmul.f32 %v3842_v51, %v3859_v2  ;;  %v3021_v5 = vpop.f32.mrb[6].mxu0 }
 0x118   : > { %3346 = vtanh.f32 %v728_v3  ;;  %v3866_v6 = vadd.f32 %v3021_v5, %v3840_v49  ;;  %v671_v7 = vpop.f32.mrb[7].mxu0 }
 0x119   : > { %3348 = vtanh.f32 %v727_v4  ;;  %v3869_v8 = vadd.f32 %v3840_v49, %v671_v7 }
 0x11a   : > { %v3339_v9 = vpop.eup %3338  ;;  %v730_v10 = vmul.f32 %v3842_v51, %v3866_v6 }
 0x11b   : > { %v3341_v11 = vpop.eup %3340  ;;  %v756_v12 = vadd.f32 1.0, %v3339_v9  ;;  %v729_v13 = vmul.f32 %v3842_v51, %v3869_v8  ;;  %v3024_v14 = vpop.f32.mrb[8].mxu0 }
 0x11c   : > { %3350 = vtanh.f32 %v730_v10  ;;  %v3876_v15 = vadd.f32 %v3024_v14, %v3840_v49  ;;  %v681_v16 = vpop.f32.mrb[9].mxu0  ;;  %v755_v17 = vadd.f32 1.0, %v3341_v11 }
 0x11d   : > { %v772_v20 = vmul.f32 0.5, %v756_v12  ;;  %3352 = vtanh.f32 %v729_v13  ;;  %v3885_v21 = vadd.f32 %v3840_v49, %v681_v16 }
 0x11e   : > { %v3343_v22 = vpop.eup %3342  ;;  %v732_v23 = vmul.f32 %v3842_v51, %v3876_v15  ;;  %v771_v24 = vmul.f32 0.5, %v755_v17 }
 0x11f   : > { %v3345_v25 = vpop.eup %3344  ;;  %v758_v26 = vadd.f32 1.0, %v3343_v22  ;;  %v731_v27 = vmul.f32 %v3842_v51, %v3885_v21  ;;  %v3027_v28 = vpop.f32.mrb[10].mxu0  ;;  %v788_v34 = vmul.f32 %v772_v20, %v647_v52 }
 0x120   : > { %v757_v30 = vadd.f32 1.0, %v3345_v25  ;;  %3354 = vtanh.f32 %v732_v23  ;;  %v3892_v31 = vadd.f32 %v3027_v28, %v3840_v49  ;;  %v691_v32 = vpop.f32.mrb[11].mxu0  ;;  %v787_v33 = vmul.f32 %v771_v24, %v642_v54 }
 0x121   : > { %v774_v35 = vmul.f32 0.5, %v758_v26  ;;  %3356 = vtanh.f32 %v731_v27  ;;  %v3895_v36 = vadd.f32 %v3840_v49, %v691_v32 }
 0x122   : > { %v3347_v37 = vpop.eup %3346  ;;  %v773_v38 = vmul.f32 0.5, %v757_v30  ;;  %v734_v39 = vmul.f32 %v3842_v51, %v3892_v31  ;;  %3050 = vmatprep.mubr.msk.f32.mxu1 %vm818_vm4, %v787_v33 }
 0x123   : > { %v3349_v40 = vpop.eup %3348  ;;  %v760_v41 = vadd.f32 1.0, %v3347_v37  ;;  %v733_v42 = vmul.f32 %v3842_v51, %v3895_v36  ;;  %v3030_v43 = vpop.f32.mrb[12].mxu0  ;;  %3051 = vmatmul.mubr.msk.f32.vlgmr.msra.gmra.mrb[0].mxu1 %vm818_vm4, %v788_v34  ;;  %v790_v50 = vmul.f32 %v774_v35, %v3849_v58 }
 0x124   : > { %v789_v44 = vmul.f32 %v773_v38, %v652_v60  ;;  %v759_v45 = vadd.f32 1.0, %v3349_v40  ;;  %3358 = vtanh.f32 %v734_v39  ;;  %v3904_v46 = vadd.f32 %v3030_v43, %v3840_v49  ;;  %v701_v47 = vpop.f32.mrb[13].mxu0  ;;  %3263 = vmatpush3.bf16.msra.mxu1 %v3834_v48  ;;  %v1099_v38 = vld [vmem:[%s4853_s6 + $0x20] sm:$0xff]  ;;  %v1100_v39 = vld [vmem:[%s4853_s6 + $0x28] sm:$0xff] }
 0x125   : > { %v776_v52 = vmul.f32 0.5, %v760_v41  ;;  %3360 = vtanh.f32 %v733_v42  ;;  %v702_v53 = vadd.f32 %v3840_v49, %v701_v47  ;;  %3265 = vmatprep.subr.bf16.mxu1 %v3264_v29  ;;  %v3268_v40 = vpack.c.bf16 %v1100_v39, %v1099_v38  ;;  %v1101_v41 = vld [vmem:[%s4853_s6 + $0x30] sm:$0xff]  ;;  %v1102_v42 = vld [vmem:[%s4853_s6 + $0x38] sm:$0xff] }
 0x126   : > { %v3351_v54 = vpop.eup %3350  ;;  %v775_v55 = vmul.f32 0.5, %v759_v45  ;;  %v736_v56 = vmul.f32 %v3842_v51, %v3904_v46  ;;  %3053 = vmatprep.mubr.msk.f32.mxu1 %vm818_vm4, %v789_v44  ;;  %v3272_v43 = vpack.c.bf16 %v1102_v42, %v1101_v41  ;;  %v1386_v44 = vld [vmem:[%s4855_s8] sm:$0xff]  ;;  %v1387_v45 = vld [vmem:[%s4855_s8 + $0x8] sm:$0xff] }
 0x127   : > { %v3353_v57 = vpop.eup %3352  ;;  %v762_v59 = vadd.f32 1.0, %v3351_v54  ;;  %v735_v60 = vmul.f32 %v3842_v51, %v702_v53  ;;  %v3033_v61 = vpop.f32.mrb[14].mxu0  ;;  %3054 = vmatmul.mubr.msk.f32.gmra.mrb[2].mxu1 %vm818_vm4, %v790_v50  ;;  %v792_v1 = vmul.f32 %v776_v52, %v3856_v0  ;;  %v3276_v47 = vpack.c.bf16 %v1387_v45, %v1386_v44  ;;  %v1389_v50 = vld [vmem:[%s4855_s8 + $0x18] sm:$0xff] }
 0x128   : > { %v791_v48 = vmul.f32 %v775_v55, %v3859_v2  ;;  %v761_v58 = vadd.f32 1.0, %v3353_v57  ;;  %3362 = vtanh.f32 %v736_v56  ;;  %v717_v62 = vadd.f32 %v3033_v61, %v3840_v49  ;;  %v711_v63 = vpop.f32.mrb[15].mxu0  ;;  %3267 = vmatpush3.bf16.msra.mxu1 %v3264_v29 }
 0x129   : > { %v778_v3 = vmul.f32 0.5, %v762_v59  ;;  %3364 = vtanh.f32 %v735_v60  ;;  %v712_v4 = vadd.f32 %v3840_v49, %v711_v63  ;;  %3269 = vmatprep.subr.bf16.mxu1 %v3268_v40  ;;  %3277 = vmatprep.subr.bf16.mxu0 %v3276_v47  ;;  %v3968_v55 = vstv %s1013_s25 }
 0x12a   : > { %v3355_v5 = vpop.eup %3354  ;;  %v777_v7 = vmul.f32 0.5, %v761_v58  ;;  %v738_v9 = vmul.f32 %v3842_v51, %v717_v62  ;;  %3056 = vmatprep.mubr.msk.f32.mxu1 %vm818_vm4, %v791_v48  ;;  %3279 = vmatpush3.bf16.msra.mxu0 %v3276_v47 }
 0x12b   : > { %v3357_v10 = vpop.eup %3356  ;;  %v764_v2 = vadd.f32 1.0, %v3355_v5  ;;  %v737_v11 = vmul.f32 %v3842_v51, %v712_v4  ;;  %3057 = vmatmul.mubr.msk.f32.gmra.mrb[4].mxu1 %vm818_vm4, %v792_v1  ;;  %v794_v0 = vmul.f32 %v778_v3, %v3866_v6 }
 0x12c   : > { %v793_v12 = vmul.f32 %v777_v7, %v3869_v8  ;;  %v763_v13 = vadd.f32 1.0, %v3357_v10  ;;  %3366 = vtanh.f32 %v738_v9  ;;  %3271 = vmatpush3.bf16.msra.mxu1 %v3268_v40 }
 0x12d   : > { %v780_v14 = vmul.f32 0.5, %v764_v2  ;;  %3368 = vtanh.f32 %v737_v11  ;;  %3273 = vmatprep.subr.bf16.mxu1 %v3272_v43 }
 0x12e   : > { %v3359_v49 = vpop.eup %3358  ;;  %v779_v16 = vmul.f32 0.5, %v763_v13  ;;  %3059 = vmatprep.mubr.msk.f32.mxu1 %vm818_vm4, %v793_v12 }
 0x12f   : > { %v3361_v17 = vpop.eup %3360  ;;  %v766_v18 = vadd.f32 1.0, %v3359_v49  ;;  %3060 = vmatmul.mubr.msk.f32.gmra.mrb[6].mxu1 %vm818_vm4, %v794_v0  ;;  %v796_v20 = vmul.f32 %v780_v14, %v3876_v15 }
 0x130   : > { %v795_v51 = vmul.f32 %v779_v16, %v3885_v21  ;;  %v765_v19 = vadd.f32 1.0, %v3361_v17  ;;  %3275 = vmatpush3.bf16.msra.mxu1 %v3272_v43 }
 0x131   : > { %v782_v8 = vmul.f32 0.5, %v766_v18 }
 0x132   : > { %v3363_v22 = vpop.eup %3362  ;;  %v781_v23 = vmul.f32 0.5, %v765_v19  ;;  %3062 = vmatprep.mubr.msk.f32.mxu1 %vm818_vm4, %v795_v51 }
 0x133   : > { %v3365_v6 = vpop.eup %3364  ;;  %v798_v24 = vmul.f32 %v782_v8, %v3892_v31  ;;  %v768_v25 = vadd.f32 1.0, %v3363_v22  ;;  %3063 = vmatmul.mubr.msk.f32.gmra.mrb[8].mxu1 %vm818_vm4, %v796_v20 }
 0x134   : > { %v797_v26 = vmul.f32 %v781_v23, %v3895_v36  ;;  %v767_v27 = vadd.f32 1.0, %v3365_v6 }
 0x135   : > { %v784_v28 = vmul.f32 0.5, %v768_v25 }
 0x136   : > { %v3367_v29 = vpop.eup %3366  ;;  %v783_v21 = vmul.f32 0.5, %v767_v27  ;;  %3065 = vmatprep.mubr.msk.f32.mxu1 %vm818_vm4, %v797_v26 }
 0x137   : > { %v3369_v15 = vpop.eup %3368  ;;  %v800_v30 = vmul.f32 %v784_v28, %v3904_v46  ;;  %v770_v32 = vadd.f32 1.0, %v3367_v29  ;;  %3066 = vmatmul.mubr.msk.f32.gmra.mrb[10].mxu1 %vm818_vm4, %v798_v24  ;;  %v1388_v46 = vld [vmem:[%s4855_s8 + $0x10] sm:$0xff] }
 0x138   : > { %v799_v33 = vmul.f32 %v783_v21, %v702_v53  ;;  %v769_v34 = vadd.f32 1.0, %v3369_v15  ;;  %v3280_v52 = vpack.c.bf16 %v1389_v50, %v1388_v46  ;;  %v3966_v53 = vld [vmem:[%s4852_s5] ss:$0 sm:$0xff] }
 0x139   : > { %v786_v31 = vmul.f32 0.5, %v770_v32 }
 0x13a   : > { %v785_v35 = vmul.f32 0.5, %v769_v34  ;;  %3068 = vmatprep.mubr.msk.f32.mxu1 %vm818_vm4, %v799_v33  ;;  %3281 = vmatprep.subr.bf16.mxu0 %v3280_v52 }
 0x13b   : > { %v802_v37 = vmul.f32 %v786_v31, %v717_v62  ;;  %3069 = vmatmul.mubr.msk.f32.gmra.mrb[12].mxu1 %vm818_vm4, %v800_v30  ;;  %3283 = vmatpush3.bf16.msra.mxu0 %v3280_v52 }
 0x13c   : > { %v801_v36 = vmul.f32 %v785_v35, %v712_v4 }
 0x13e   : > { %3071 = vmatprep.mubr.msk.f32.mxu1 %vm818_vm4, %v801_v36 }
 0x13f   : > { %3072 = vmatmul.mubr.msk.f32.gmra.mrb[14].mxu1 %vm818_vm4, %v802_v37 }
 0x1f6   : > { %v3052_v54 = vpop.f32.mrb[0].mxu1 }
 0x1f7   : > { %v939_v56 = vadd.f32 %v3052_v54, %v3966_v53  ;;  %v933_v57 = vpop.f32.mrb[1].mxu1 }
 0x1f8   : > { %v934_v59 = vadd.f32 %v3966_v53, %v933_v57 }
 0x1f9   : > { %v1016_v60 = vmul.f32 %v3968_v55, %v939_v56 }
 0x1fa   : > { %v1015_v61 = vmul.f32 %v3968_v55, %v934_v59  ;;  %v3055_v48 = vpop.f32.mrb[2].mxu1 }
 0x1fb   : > { %3370 = vtanh.f32 %v1016_v60  ;;  %v3975_v58 = vadd.f32 %v3055_v48, %v3966_v53  ;;  %v943_v62 = vpop.f32.mrb[3].mxu1 }
 0x1fc   : > { %3372 = vtanh.f32 %v1015_v61  ;;  %v944_v63 = vadd.f32 %v3966_v53, %v943_v62 }
 0x1fd   : > { %v1018_v1 = vmul.f32 %v3968_v55, %v3975_v58 }
 0x1fe   : > { %v1017_v3 = vmul.f32 %v3968_v55, %v944_v63  ;;  %v3058_v4 = vpop.f32.mrb[4].mxu1 }
 0x1ff   : > { %3374 = vtanh.f32 %v1018_v1  ;;  %v3982_v5 = vadd.f32 %v3058_v4, %v3966_v53  ;;  %v953_v7 = vpop.f32.mrb[5].mxu1 }
 0x200   : > { %3376 = vtanh.f32 %v1017_v3  ;;  %v3985_v9 = vadd.f32 %v3966_v53, %v953_v7 }
 0x201   : > { %v1020_v10 = vmul.f32 %v3968_v55, %v3982_v5 }
 0x202   : > { %v1019_v2 = vmul.f32 %v3968_v55, %v3985_v9  ;;  %v3061_v11 = vpop.f32.mrb[6].mxu1 }
 0x203   : > { %3378 = vtanh.f32 %v1020_v10  ;;  %v3992_v12 = vadd.f32 %v3061_v11, %v3966_v53  ;;  %v963_v13 = vpop.f32.mrb[7].mxu1 }
 0x204   : > { %3380 = vtanh.f32 %v1019_v2  ;;  %v3995_v0 = vadd.f32 %v3966_v53, %v963_v13 }
 0x205   : > { %v3371_v14 = vpop.eup %3370  ;;  %v1022_v49 = vmul.f32 %v3968_v55, %v3992_v12 }
 0x206   : > { %v3373_v16 = vpop.eup %3372  ;;  %v1048_v17 = vadd.f32 1.0, %v3371_v14  ;;  %v1021_v18 = vmul.f32 %v3968_v55, %v3995_v0  ;;  %v3064_v51 = vpop.f32.mrb[8].mxu1 }
 0x207   : > { %v1047_v19 = vadd.f32 1.0, %v3373_v16  ;;  %3382 = vtanh.f32 %v1022_v49  ;;  %v4002_v20 = vadd.f32 %v3064_v51, %v3966_v53  ;;  %v973_v8 = vpop.f32.mrb[9].mxu1 }
 0x208   : > { %v1064_v22 = vmul.f32 0.5, %v1048_v17  ;;  %3384 = vtanh.f32 %v1021_v18  ;;  %v4005_v23 = vadd.f32 %v3966_v53, %v973_v8 }
 0x209   : > { %v3375_v6 = vpop.eup %3374  ;;  %v1063_v24 = vmul.f32 0.5, %v1047_v19  ;;  %v1024_v25 = vmul.f32 %v3968_v55, %v4002_v20 }
 0x20a   : > { %v3377_v26 = vpop.eup %3376  ;;  %v1050_v27 = vadd.f32 1.0, %v3375_v6  ;;  %v1023_v28 = vmul.f32 %v3968_v55, %v4005_v23  ;;  %v3067_v29 = vpop.f32.mrb[10].mxu1  ;;  %v1080_v33 = vmul.f32 %v1064_v22, %v939_v56 }
 0x20b   : > { %v1079_v21 = vmul.f32 %v1063_v24, %v934_v59  ;;  %v1049_v15 = vadd.f32 1.0, %v3377_v26  ;;  %3386 = vtanh.f32 %v1024_v25  ;;  %v4012_v30 = vadd.f32 %v3067_v29, %v3966_v53  ;;  %v983_v32 = vpop.f32.mrb[11].mxu1 }
 0x20c   : > { %v1066_v34 = vmul.f32 0.5, %v1050_v27  ;;  %3388 = vtanh.f32 %v1023_v28  ;;  %v4015_v31 = vadd.f32 %v3966_v53, %v983_v32 }
 0x20d   : > { %v3379_v35 = vpop.eup %3378  ;;  %v1065_v37 = vmul.f32 0.5, %v1049_v15  ;;  %v1026_v36 = vmul.f32 %v3968_v55, %v4012_v30  ;;  %3090 = vmatprep.mubr.msk.f32.mxu1 %vm818_vm4, %v1079_v21 }
 0x20e   : > { %v3381_v38 = vpop.eup %3380  ;;  %v1052_v39 = vadd.f32 1.0, %v3379_v35  ;;  %v1025_v40 = vmul.f32 %v3968_v55, %v4015_v31  ;;  %v3070_v41 = vpop.f32.mrb[12].mxu1  ;;  %3091 = vmatmul.mubr.msk.f32.vlgmr.msra.gmra.mrb[16].mxu1 %vm818_vm4, %v1080_v33  ;;  %v1082_v46 = vmul.f32 %v1066_v34, %v3975_v58 }
 0x20f   : > { %v1081_v42 = vmul.f32 %v1065_v37, %v944_v63  ;;  %v1051_v43 = vadd.f32 1.0, %v3381_v38  ;;  %3390 = vtanh.f32 %v1026_v36  ;;  %v4024_v44 = vadd.f32 %v3070_v41, %v3966_v53  ;;  %v993_v45 = vpop.f32.mrb[13].mxu1  ;;  %v1390_v37 = vld [vmem:[%s4855_s8 + $0x20] sm:$0xff]  ;;  %v1391_v36 = vld [vmem:[%s4855_s8 + $0x28] sm:$0xff] }
 0x210   : > { %v1068_v47 = vmul.f32 0.5, %v1052_v39  ;;  %3392 = vtanh.f32 %v1025_v40  ;;  %v994_v50 = vadd.f32 %v3966_v53, %v993_v45  ;;  %v3284_v38 = vpack.c.bf16 %v1391_v36, %v1390_v37  ;;  %v1392_v39 = vld [vmem:[%s4855_s8 + $0x30] sm:$0xff]  ;;  %v1393_v40 = vld [vmem:[%s4855_s8 + $0x38] sm:$0xff]  ;;  %v4079_v45 = vld [vmem:[%s4854_s7] ss:$0 sm:$0xff] }
 0x211   : > { %v3383_v52 = vpop.eup %3382  ;;  %v1067_v54 = vmul.f32 0.5, %v1051_v43  ;;  %v1028_v56 = vmul.f32 %v3968_v55, %v4024_v44  ;;  %3093 = vmatprep.mubr.msk.f32.mxu1 %vm818_vm4, %v1081_v42  ;;  %v3288_v41 = vpack.c.bf16 %v1393_v40, %v1392_v39  ;;  %v1677_v42 = vld [vmem:[%s4857_s10] sm:$0xff]  ;;  %v1678_v43 = vld [vmem:[%s4857_s10 + $0x8] sm:$0xff] }
 0x212   : > { %v3385_v57 = vpop.eup %3384  ;;  %v1054_v59 = vadd.f32 1.0, %v3383_v52  ;;  %v1027_v60 = vmul.f32 %v3968_v55, %v994_v50  ;;  %v3073_v61 = vpop.f32.mrb[14].mxu1  ;;  %3094 = vmatmul.mubr.msk.f32.gmra.mrb[18].mxu1 %vm818_vm4, %v1082_v46  ;;  %v1084_v1 = vmul.f32 %v1068_v47, %v3982_v5  ;;  %3285 = vmatprep.subr.bf16.mxu0 %v3284_v38  ;;  %v4081_v47 = vstv %s1304_s15  ;;  %s2349_s15 = smul.f32 0.5, %s2843_s24 }
 0x213   : > { %v1083_v48 = vmul.f32 %v1067_v54, %v3985_v9  ;;  %v1053_v58 = vadd.f32 1.0, %v3385_v57  ;;  %3394 = vtanh.f32 %v1028_v56  ;;  %v1009_v62 = vadd.f32 %v3073_v61, %v3966_v53  ;;  %v1003_v63 = vpop.f32.mrb[15].mxu1  ;;  %3287 = vmatpush3.bf16.msra.mxu0 %v3284_v38 }
 0x214   : > { %v1070_v3 = vmul.f32 0.5, %v1054_v59  ;;  %3396 = vtanh.f32 %v1027_v60  ;;  %v1004_v4 = vadd.f32 %v3966_v53, %v1003_v63  ;;  %3289 = vmatprep.subr.bf16.mxu0 %v3288_v41 }
 0x215   : > { %v3387_v7 = vpop.eup %3386  ;;  %v1069_v10 = vmul.f32 0.5, %v1053_v58  ;;  %v1030_v2 = vmul.f32 %v3968_v55, %v1009_v62  ;;  %3096 = vmatprep.mubr.msk.f32.mxu1 %vm818_vm4, %v1083_v48 }
 0x216   : > { %v3389_v11 = vpop.eup %3388  ;;  %v1056_v13 = vadd.f32 1.0, %v3387_v7  ;;  %v1029_v9 = vmul.f32 %v3968_v55, %v1004_v4  ;;  %3097 = vmatmul.mubr.msk.f32.gmra.mrb[20].mxu1 %vm818_vm4, %v1084_v1  ;;  %v1086_v5 = vmul.f32 %v1070_v3, %v3992_v12 }
 0x217   : > { %v1085_v14 = vmul.f32 %v1069_v10, %v3995_v0  ;;  %v1055_v49 = vadd.f32 1.0, %v3389_v11  ;;  %3398 = vtanh.f32 %v1030_v2  ;;  %3291 = vmatpush3.bf16.msra.mxu0 %v3288_v41 }
 0x218   : > { %v1072_v16 = vmul.f32 0.5, %v1056_v13  ;;  %3400 = vtanh.f32 %v1029_v9 }
 0x219   : > { %v3391_v53 = vpop.eup %3390  ;;  %v1071_v17 = vmul.f32 0.5, %v1055_v49  ;;  %3099 = vmatprep.mubr.msk.f32.mxu1 %vm818_vm4, %v1085_v14 }
 0x21a   : > { %v3393_v18 = vpop.eup %3392  ;;  %v1058_v51 = vadd.f32 1.0, %v3391_v53  ;;  %3100 = vmatmul.mubr.msk.f32.gmra.mrb[22].mxu1 %vm818_vm4, %v1086_v5  ;;  %v1088_v8 = vmul.f32 %v1072_v16, %v4002_v20 }
 0x21b   : > { %v1087_v55 = vmul.f32 %v1071_v17, %v4005_v23  ;;  %v1057_v19 = vadd.f32 1.0, %v3393_v18 }
 0x21c   : > { %v1074_v0 = vmul.f32 0.5, %v1058_v51 }
 0x21d   : > { %v3395_v22 = vpop.eup %3394  ;;  %v1073_v6 = vmul.f32 0.5, %v1057_v19  ;;  %3102 = vmatprep.mubr.msk.f32.mxu1 %vm818_vm4, %v1087_v55 }
 0x21e   : > { %v3397_v12 = vpop.eup %3396  ;;  %v1060_v24 = vadd.f32 1.0, %v3395_v22  ;;  %3103 = vmatmul.mubr.msk.f32.gmra.mrb[24].mxu1 %vm818_vm4, %v1088_v8  ;;  %v1090_v27 = vmul.f32 %v1074_v0, %v4012_v30 }
 0x21f   : > { %v1089_v25 = vmul.f32 %v1073_v6, %v4015_v31  ;;  %v1059_v26 = vadd.f32 1.0, %v3397_v12 }
 0x220   : > { %v1076_v28 = vmul.f32 0.5, %v1060_v24 }
 0x221   : > { %v3399_v29 = vpop.eup %3398  ;;  %v1075_v23 = vmul.f32 0.5, %v1059_v26  ;;  %3105 = vmatprep.mubr.msk.f32.mxu1 %vm818_vm4, %v1089_v25 }
 0x222   : > { %v3401_v20 = vpop.eup %3400  ;;  %v1062_v21 = vadd.f32 1.0, %v3399_v29  ;;  %3106 = vmatmul.mubr.msk.f32.gmra.mrb[26].mxu1 %vm818_vm4, %v1090_v27  ;;  %v1092_v33 = vmul.f32 %v1076_v28, %v4024_v44  ;;  %v3292_v44 = vpack.c.bf16 %v1678_v43, %v1677_v42 }
 0x223   : > { %v1091_v15 = vmul.f32 %v1075_v23, %v994_v50  ;;  %v1061_v32 = vadd.f32 1.0, %v3401_v20 }
 0x224   : > { %v1078_v34 = vmul.f32 0.5, %v1062_v21  ;;  %3293 = vmatprep.subr.bf16.mxu1 %v3292_v44 }
 0x225   : > { %v1077_v35 = vmul.f32 0.5, %v1061_v32  ;;  %3108 = vmatprep.mubr.msk.f32.mxu1 %vm818_vm4, %v1091_v15  ;;  %3295 = vmatpush3.bf16.msra.mxu1 %v3292_v44 }
 0x226   : > { %3109 = vmatmul.mubr.msk.f32.gmra.mrb[28].mxu1 %vm818_vm4, %v1092_v33  ;;  %v1094_v31 = vmul.f32 %v1078_v34, %v1009_v62 }
 0x227   : > { %v1093_v30 = vmul.f32 %v1077_v35, %v1004_v4 }
 0x229   : > { %3111 = vmatprep.mubr.msk.f32.mxu1 %vm818_vm4, %v1093_v30 }
 0x22a   : > { %3112 = vmatmul.mubr.msk.f32.gmra.mrb[30].mxu1 %vm818_vm4, %v1094_v31 }
 0x2e1   : > { %v3092_v46 = vpop.f32.mrb[16].mxu1 }
 0x2e2   : > { %v1230_v50 = vadd.f32 %v3092_v46, %v4079_v45  ;;  %v1224_v52 = vpop.f32.mrb[17].mxu1 }
 0x2e3   : > { %v1225_v54 = vadd.f32 %v4079_v45, %v1224_v52 }
 0x2e4   : > { %v1307_v56 = vmul.f32 %v4081_v47, %v1230_v50 }
 0x2e5   : > { %v1306_v57 = vmul.f32 %v4081_v47, %v1225_v54  ;;  %v3095_v59 = vpop.f32.mrb[18].mxu1 }
 0x2e6   : > { %3402 = vtanh.f32 %v1307_v56  ;;  %v4088_v60 = vadd.f32 %v3095_v59, %v4079_v45  ;;  %v1234_v61 = vpop.f32.mrb[19].mxu1 }
 0x2e7   : > { %3404 = vtanh.f32 %v1306_v57  ;;  %v1235_v48 = vadd.f32 %v4079_v45, %v1234_v61 }
 0x2e8   : > { %v1309_v58 = vmul.f32 %v4081_v47, %v4088_v60 }
 0x2e9   : > { %v1308_v62 = vmul.f32 %v4081_v47, %v1235_v48  ;;  %v3098_v63 = vpop.f32.mrb[20].mxu1 }
 0x2ea   : > { %3406 = vtanh.f32 %v1309_v58  ;;  %v4095_v1 = vadd.f32 %v3098_v63, %v4079_v45  ;;  %v1244_v3 = vpop.f32.mrb[21].mxu1 }
 0x2eb   : > { %3408 = vtanh.f32 %v1308_v62  ;;  %v4098_v4 = vadd.f32 %v4079_v45, %v1244_v3 }
 0x2ec   : > { %v1311_v7 = vmul.f32 %v4081_v47, %v4095_v1 }
 0x2ed   : > { %v1310_v10 = vmul.f32 %v4081_v47, %v4098_v4  ;;  %v3101_v2 = vpop.f32.mrb[22].mxu1 }
 0x2ee   : > { %3410 = vtanh.f32 %v1311_v7  ;;  %v4105_v11 = vadd.f32 %v3101_v2, %v4079_v45  ;;  %v1254_v13 = vpop.f32.mrb[23].mxu1 }
 0x2ef   : > { %3412 = vtanh.f32 %v1310_v10  ;;  %v4108_v9 = vadd.f32 %v4079_v45, %v1254_v13 }
 0x2f0   : > { %v3403_v14 = vpop.eup %3402  ;;  %v1313_v49 = vmul.f32 %v4081_v47, %v4105_v11 }
 0x2f1   : > { %v3405_v5 = vpop.eup %3404  ;;  %v1339_v16 = vadd.f32 1.0, %v3403_v14  ;;  %v1312_v53 = vmul.f32 %v4081_v47, %v4108_v9  ;;  %v3104_v17 = vpop.f32.mrb[24].mxu1 }
 0x2f2   : > { %v1338_v18 = vadd.f32 1.0, %v3405_v5  ;;  %3414 = vtanh.f32 %v1313_v49  ;;  %v4115_v51 = vadd.f32 %v3104_v17, %v4079_v45  ;;  %v1264_v55 = vpop.f32.mrb[25].mxu1 }
 0x2f3   : > { %v1355_v19 = vmul.f32 0.5, %v1339_v16  ;;  %3416 = vtanh.f32 %v1312_v53  ;;  %v4118_v8 = vadd.f32 %v4079_v45, %v1264_v55 }
 0x2f4   : > { %v3407_v0 = vpop.eup %3406  ;;  %v1354_v22 = vmul.f32 0.5, %v1338_v18  ;;  %v1315_v6 = vmul.f32 %v4081_v47, %v4115_v51 }
 0x2f5   : > { %v3409_v12 = vpop.eup %3408  ;;  %v1341_v24 = vadd.f32 1.0, %v3407_v0  ;;  %v1314_v25 = vmul.f32 %v4081_v47, %v4118_v8  ;;  %v3107_v26 = vpop.f32.mrb[26].mxu1  ;;  %v1371_v20 = vmul.f32 %v1355_v19, %v1230_v50 }
 0x2f6   : > { %v1370_v27 = vmul.f32 %v1354_v22, %v1225_v54  ;;  %v1340_v28 = vadd.f32 1.0, %v3409_v12  ;;  %3418 = vtanh.f32 %v1315_v6  ;;  %v4125_v29 = vadd.f32 %v3107_v26, %v4079_v45  ;;  %v1274_v23 = vpop.f32.mrb[27].mxu1 }
 0x2f7   : > { %v1357_v21 = vmul.f32 0.5, %v1341_v24  ;;  %3420 = vtanh.f32 %v1314_v25  ;;  %v4128_v15 = vadd.f32 %v4079_v45, %v1274_v23 }
 0x2f8   : > { %v3411_v32 = vpop.eup %3410  ;;  %v1356_v33 = vmul.f32 0.5, %v1340_v28  ;;  %v1317_v34 = vmul.f32 %v4081_v47, %v4125_v29  ;;  %3130 = vmatprep.mubr.msk.f32.mxu0 %vm818_vm4, %v1370_v27 }
 0x2f9   : > { %v3413_v35 = vpop.eup %3412  ;;  %v1343_v30 = vadd.f32 1.0, %v3411_v32  ;;  %v1316_v31 = vmul.f32 %v4081_v47, %v4128_v15  ;;  %v3110_v37 = vpop.f32.mrb[28].mxu1  ;;  %3131 = vmatmul.mubr.msk.f32.vlgmr.msra.gmra.mrb[16].mxu0 %vm818_vm4, %v1371_v20  ;;  %v1373_v41 = vmul.f32 %v1357_v21, %v4088_v60 }
 0x2fa   : > { %v1372_v36 = vmul.f32 %v1356_v33, %v1235_v48  ;;  %v1342_v38 = vadd.f32 1.0, %v3413_v35  ;;  %3422 = vtanh.f32 %v1317_v34  ;;  %v4137_v39 = vadd.f32 %v3110_v37, %v4079_v45  ;;  %v1284_v40 = vpop.f32.mrb[29].mxu1  ;;  %v1679_v33 = vld [vmem:[%s4857_s10 + $0x10] sm:$0xff]  ;;  %v1680_v34 = vld [vmem:[%s4857_s10 + $0x18] sm:$0xff]  ;;  %v1965_v37 = vld [vmem:[%s4859_s12] sm:$0xff] }
 0x2fb   : > { %v1359_v42 = vmul.f32 0.5, %v1343_v30  ;;  %3424 = vtanh.f32 %v1316_v31  ;;  %v1285_v43 = vadd.f32 %v4079_v45, %v1284_v40  ;;  %v3296_v35 = vpack.c.bf16 %v1680_v34, %v1679_v33  ;;  %v1966_v30 = vld [vmem:[%s4859_s12 + $0x8] sm:$0xff]  ;;  %v1969_v31 = vld [vmem:[%s4859_s12 + $0x20] sm:$0xff] }
 0x2fc   : > { %v3415_v44 = vpop.eup %3414  ;;  %v1358_v46 = vmul.f32 0.5, %v1342_v38  ;;  %v1319_v50 = vmul.f32 %v4081_v47, %v4137_v39  ;;  %3133 = vmatprep.mubr.msk.f32.mxu0 %vm818_vm4, %v1372_v36  ;;  %v3300_v36 = vpack.c.bf16 %v1969_v31, %v1966_v30  ;;  %v1968_v38 = vld [vmem:[%s4859_s12 + $0x18] sm:$0xff]  ;;  %v4192_v40 = vld [vmem:[%s4856_s9] ss:$0 sm:$0xff] }
 0x2fd   : > { %v3417_v52 = vpop.eup %3416  ;;  %v1345_v54 = vadd.f32 1.0, %v3415_v44  ;;  %v1318_v56 = vmul.f32 %v4081_v47, %v1285_v43  ;;  %v3113_v57 = vpop.f32.mrb[30].mxu1  ;;  %3134 = vmatmul.mubr.msk.f32.gmra.mrb[18].mxu0 %vm818_vm4, %v1373_v41  ;;  %v1375_v58 = vmul.f32 %v1359_v42, %v4095_v1  ;;  %3297 = vmatprep.subr.bf16.mxu1 %v3296_v35  ;;  %v4194_v42 = vstv %s1595_s17 }
 0x2fe   : > { %v1374_v59 = vmul.f32 %v1358_v46, %v4098_v4  ;;  %v1344_v60 = vadd.f32 1.0, %v3417_v52  ;;  %3426 = vtanh.f32 %v1319_v50  ;;  %v1300_v61 = vadd.f32 %v3113_v57, %v4079_v45  ;;  %v1294_v48 = vpop.f32.mrb[31].mxu1  ;;  %3299 = vmatpush3.bf16.msra.mxu1 %v3296_v35  ;;  %3301 = vmatprep.subr.bf16.mxu0 %v3300_v36 }
 0x2ff   : > { %v1361_v62 = vmul.f32 0.5, %v1345_v54  ;;  %3428 = vtanh.f32 %v1318_v56  ;;  %v1295_v63 = vadd.f32 %v4079_v45, %v1294_v48 }
 0x300   : > { %v3419_v3 = vpop.eup %3418  ;;  %v1360_v7 = vmul.f32 0.5, %v1344_v60  ;;  %v1321_v10 = vmul.f32 %v4081_v47, %v1300_v61  ;;  %3136 = vmatprep.mubr.msk.f32.mxu0 %vm818_vm4, %v1374_v59 }
 0x301   : > { %v3421_v2 = vpop.eup %3420  ;;  %v1347_v13 = vadd.f32 1.0, %v3419_v3  ;;  %v1320_v4 = vmul.f32 %v4081_v47, %v1295_v63  ;;  %3137 = vmatmul.mubr.msk.f32.gmra.mrb[20].mxu0 %vm818_vm4, %v1375_v58  ;;  %v1377_v1 = vmul.f32 %v1361_v62, %v4105_v11 }
 0x302   : > { %v1376_v14 = vmul.f32 %v1360_v7, %v4108_v9  ;;  %v1346_v49 = vadd.f32 1.0, %v3421_v2  ;;  %3430 = vtanh.f32 %v1321_v10 }
 0x303   : > { %v1363_v5 = vmul.f32 0.5, %v1347_v13  ;;  %3432 = vtanh.f32 %v1320_v4 }
 0x304   : > { %v3423_v45 = vpop.eup %3422  ;;  %v1362_v16 = vmul.f32 0.5, %v1346_v49  ;;  %3139 = vmatprep.mubr.msk.f32.mxu0 %vm818_vm4, %v1376_v14 }
 0x305   : > { %v3425_v53 = vpop.eup %3424  ;;  %v1349_v17 = vadd.f32 1.0, %v3423_v45  ;;  %3140 = vmatmul.mubr.msk.f32.gmra.mrb[22].mxu0 %vm818_vm4, %v1377_v1  ;;  %v1379_v55 = vmul.f32 %v1363_v5, %v4115_v51 }
 0x306   : > { %v1378_v47 = vmul.f32 %v1362_v16, %v4118_v8  ;;  %v1348_v18 = vadd.f32 1.0, %v3425_v53 }
 0x307   : > { %v1365_v9 = vmul.f32 0.5, %v1349_v17 }
 0x308   : > { %v3427_v19 = vpop.eup %3426  ;;  %v1364_v0 = vmul.f32 0.5, %v1348_v18  ;;  %3142 = vmatprep.mubr.msk.f32.mxu0 %vm818_vm4, %v1378_v47 }
 0x309   : > { %v3429_v11 = vpop.eup %3428  ;;  %v1351_v22 = vadd.f32 1.0, %v3427_v19  ;;  %3143 = vmatmul.mubr.msk.f32.gmra.mrb[24].mxu0 %vm818_vm4, %v1379_v55  ;;  %v1381_v24 = vmul.f32 %v1365_v9, %v4125_v29 }
 0x30a   : > { %v1380_v6 = vmul.f32 %v1364_v0, %v4128_v15  ;;  %v1350_v12 = vadd.f32 1.0, %v3429_v11 }
 0x30b   : > { %v1367_v25 = vmul.f32 0.5, %v1351_v22 }
 0x30c   : > { %v3431_v26 = vpop.eup %3430  ;;  %v1366_v8 = vmul.f32 0.5, %v1350_v12  ;;  %3145 = vmatprep.mubr.msk.f32.mxu0 %vm818_vm4, %v1380_v6 }
 0x30d   : > { %v3433_v51 = vpop.eup %3432  ;;  %v1353_v27 = vadd.f32 1.0, %v3431_v26  ;;  %3146 = vmatmul.mubr.msk.f32.gmra.mrb[26].mxu0 %vm818_vm4, %v1381_v24  ;;  %v1383_v20 = vmul.f32 %v1367_v25, %v4137_v39  ;;  %v3302_v39 = vpack.c.bf16 %v1968_v38, %v1965_v37 }
 0x30e   : > { %v1382_v28 = vmul.f32 %v1366_v8, %v1285_v43  ;;  %v1352_v23 = vadd.f32 1.0, %v3433_v51 }
 0x30f   : > { %v1369_v21 = vmul.f32 0.5, %v1353_v27  ;;  %3303 = vmatpush1.bf16.msra.mxu0 %v3302_v39 }
 0x310   : > { %v1368_v32 = vmul.f32 0.5, %v1352_v23  ;;  %3148 = vmatprep.mubr.msk.f32.mxu0 %vm818_vm4, %v1382_v28 }
 0x311   : > { %3149 = vmatmul.mubr.msk.f32.gmra.mrb[28].mxu0 %vm818_vm4, %v1383_v20  ;;  %v1385_v15 = vmul.f32 %v1369_v21, %v1300_v61 }
 0x312   : > { %v1384_v29 = vmul.f32 %v1368_v32, %v1295_v63 }
 0x314   : > { %3151 = vmatprep.mubr.msk.f32.mxu0 %vm818_vm4, %v1384_v29 }
 0x315   : > { %3152 = vmatmul.mubr.msk.f32.gmra.mrb[30].mxu0 %vm818_vm4, %v1385_v15 }
 0x3cc   : > { %v3132_v41 = vpop.f32.mrb[16].mxu0 }
 0x3cd   : > { %v1521_v43 = vadd.f32 %v3132_v41, %v4192_v40  ;;  %v1515_v44 = vpop.f32.mrb[17].mxu0 }
 0x3ce   : > { %v1516_v46 = vadd.f32 %v4192_v40, %v1515_v44 }
 0x3cf   : > { %v1598_v50 = vmul.f32 %v4194_v42, %v1521_v43 }
 0x3d0   : > { %v1597_v52 = vmul.f32 %v4194_v42, %v1516_v46  ;;  %v3135_v54 = vpop.f32.mrb[18].mxu0 }
 0x3d1   : > { %3434 = vtanh.f32 %v1598_v50  ;;  %v4201_v56 = vadd.f32 %v3135_v54, %v4192_v40  ;;  %v1525_v57 = vpop.f32.mrb[19].mxu0 }
 0x3d2   : > { %3436 = vtanh.f32 %v1597_v52  ;;  %v1526_v59 = vadd.f32 %v4192_v40, %v1525_v57 }
 0x3d3   : > { %v1600_v60 = vmul.f32 %v4194_v42, %v4201_v56 }
 0x3d4   : > { %v1599_v61 = vmul.f32 %v4194_v42, %v1526_v59  ;;  %v3138_v48 = vpop.f32.mrb[20].mxu0 }
 0x3d5   : > { %3438 = vtanh.f32 %v1600_v60  ;;  %v4208_v58 = vadd.f32 %v3138_v48, %v4192_v40  ;;  %v1535_v62 = vpop.f32.mrb[21].mxu0 }
 0x3d6   : > { %3440 = vtanh.f32 %v1599_v61  ;;  %v4211_v63 = vadd.f32 %v4192_v40, %v1535_v62 }
 0x3d7   : > { %v1602_v3 = vmul.f32 %v4194_v42, %v4208_v58 }
 0x3d8   : > { %v1601_v7 = vmul.f32 %v4194_v42, %v4211_v63  ;;  %v3141_v10 = vpop.f32.mrb[22].mxu0 }
 0x3d9   : > { %3442 = vtanh.f32 %v1602_v3  ;;  %v4218_v2 = vadd.f32 %v3141_v10, %v4192_v40  ;;  %v1545_v13 = vpop.f32.mrb[23].mxu0 }
 0x3da   : > { %3444 = vtanh.f32 %v1601_v7  ;;  %v4221_v4 = vadd.f32 %v4192_v40, %v1545_v13 }
 0x3db   : > { %v3435_v14 = vpop.eup %3434  ;;  %v1604_v49 = vmul.f32 %v4194_v42, %v4218_v2 }
 0x3dc   : > { %v3437_v1 = vpop.eup %3436  ;;  %v1630_v5 = vadd.f32 1.0, %v3435_v14  ;;  %v1603_v45 = vmul.f32 %v4194_v42, %v4221_v4  ;;  %v3144_v16 = vpop.f32.mrb[24].mxu0 }
 0x3dd   : > { %v1629_v53 = vadd.f32 1.0, %v3437_v1  ;;  %3446 = vtanh.f32 %v1604_v49  ;;  %v4228_v17 = vadd.f32 %v3144_v16, %v4192_v40  ;;  %v1555_v47 = vpop.f32.mrb[25].mxu0 }
 0x3de   : > { %v1646_v18 = vmul.f32 0.5, %v1630_v5  ;;  %3448 = vtanh.f32 %v1603_v45  ;;  %v4231_v55 = vadd.f32 %v4192_v40, %v1555_v47 }
 0x3df   : > { %v3439_v9 = vpop.eup %3438  ;;  %v1645_v19 = vmul.f32 0.5, %v1629_v53  ;;  %v1606_v0 = vmul.f32 %v4194_v42, %v4228_v17 }
 0x3e0   : > { %v3441_v11 = vpop.eup %3440  ;;  %v1632_v22 = vadd.f32 1.0, %v3439_v9  ;;  %v1605_v6 = vmul.f32 %v4194_v42, %v4231_v55  ;;  %v3147_v12 = vpop.f32.mrb[26].mxu0  ;;  %v1662_v51 = vmul.f32 %v1646_v18, %v1521_v43 }
 0x3e1   : > { %v1661_v24 = vmul.f32 %v1645_v19, %v1516_v46  ;;  %v1631_v25 = vadd.f32 1.0, %v3441_v11  ;;  %3450 = vtanh.f32 %v1606_v0  ;;  %v4238_v26 = vadd.f32 %v3147_v12, %v4192_v40  ;;  %v1565_v8 = vpop.f32.mrb[27].mxu0 }
 0x3e2   : > { %v1648_v27 = vmul.f32 0.5, %v1632_v22  ;;  %3452 = vtanh.f32 %v1605_v6  ;;  %v4241_v28 = vadd.f32 %v4192_v40, %v1565_v8 }
 0x3e3   : > { %v3443_v23 = vpop.eup %3442  ;;  %v1647_v20 = vmul.f32 0.5, %v1631_v25  ;;  %v1608_v21 = vmul.f32 %v4194_v42, %v4238_v26  ;;  %3162 = vmatprep.mubr.msk.f32.mxu1 %vm1688_vm5, %v1661_v24 }
 0x3e4   : > { %v3445_v32 = vpop.eup %3444  ;;  %v1634_v29 = vadd.f32 1.0, %v3443_v23  ;;  %v1607_v15 = vmul.f32 %v4194_v42, %v4241_v28  ;;  %v3150_v33 = vpop.f32.mrb[28].mxu0  ;;  %3163 = vmatmul.mubr.msk.f32.vlgmr.msra.gmra.mrb[32].mxu1 %vm1688_vm5, %v1662_v51  ;;  %v1664_v37 = vmul.f32 %v1648_v27, %v4201_v56 }
 0x3e5   : > { %v1663_v34 = vmul.f32 %v1647_v20, %v1526_v59  ;;  %v1633_v35 = vadd.f32 1.0, %v3445_v32  ;;  %3454 = vtanh.f32 %v1608_v21  ;;  %v4250_v30 = vadd.f32 %v3150_v33, %v4192_v40  ;;  %v1575_v31 = vpop.f32.mrb[29].mxu0  ;;  %v1967_v20 = vld [vmem:[%s4859_s12 + $0x10] sm:$0xff]  ;;  %v1970_v21 = vld [vmem:[%s4859_s12 + $0x28] sm:$0xff] }
 0x3e6   : > { %v1650_v36 = vmul.f32 0.5, %v1634_v29  ;;  %3456 = vtanh.f32 %v1607_v15  ;;  %v1576_v38 = vadd.f32 %v4192_v40, %v1575_v31  ;;  %v3308_v32 = vpack.c.bf16 %v1970_v21, %v1967_v20  ;;  %v1972_v29 = vld [vmem:[%s4859_s12 + $0x38] sm:$0xff]  ;;  %v1975_v15 = vld [vmem:[%s4859_s12 + $0x50] sm:$0xff] }
 0x3e7   : > { %v3447_v39 = vpop.eup %3446  ;;  %v1649_v41 = vmul.f32 0.5, %v1633_v35  ;;  %v1610_v43 = vmul.f32 %v4194_v42, %v4250_v30  ;;  %3165 = vmatprep.mubr.msk.f32.mxu1 %vm1688_vm5, %v1663_v34  ;;  %v3304_v33 = vpack.c.bf16 %v1975_v15, %v1972_v29  ;;  %v1971_v34 = vld [vmem:[%s4859_s12 + $0x30] sm:$0xff]  ;;  %v1974_v35 = vld [vmem:[%s4859_s12 + $0x48] sm:$0xff] }
 0x3e8   : > { %v3449_v44 = vpop.eup %3448  ;;  %v1636_v46 = vadd.f32 1.0, %v3447_v39  ;;  %v1609_v50 = vmul.f32 %v4194_v42, %v1576_v38  ;;  %v3153_v52 = vpop.f32.mrb[30].mxu0  ;;  %3166 = vmatmul.mubr.msk.f32.gmra.mrb[34].mxu1 %vm1688_vm5, %v1664_v37  ;;  %v1666_v60 = vmul.f32 %v1650_v36, %v4208_v58  ;;  %3309 = vmatprep.subr.bf16.mxu1 %v3308_v32  ;;  %v3306_v31 = vpack.c.bf16 %v1974_v35, %v1971_v34  ;;  %v1976_v37 = vld [vmem:[%s4859_s12 + $0x58] sm:$0xff]  ;;  %v4312_v39 = vld [vmem:[%s4858_s11] ss:$0 sm:$0xff] }
 0x3e9   : > { %v1665_v54 = vmul.f32 %v1649_v41, %v4211_v63  ;;  %v1635_v56 = vadd.f32 1.0, %v3449_v44  ;;  %3458 = vtanh.f32 %v1610_v43  ;;  %v1591_v57 = vadd.f32 %v3153_v52, %v4192_v40  ;;  %v1585_v59 = vpop.f32.mrb[31].mxu0  ;;  %3311 = vmatpush3.bf16.msra.mxu1 %v3308_v32  ;;  %3305 = vmatprep.subr.bf16.mxu0 %v3304_v33 }
 0x3ea   : > { %v1652_v61 = vmul.f32 0.5, %v1636_v46  ;;  %3460 = vtanh.f32 %v1609_v50  ;;  %v1586_v48 = vadd.f32 %v4192_v40, %v1585_v59  ;;  %3307 = vmatpush1.bf16.msra.mxu0 %v3306_v31  ;;  %v4314_v43 = vstv %s1883_s21 }
 0x3eb   : > { %v3451_v62 = vpop.eup %3450  ;;  %v1651_v3 = vmul.f32 0.5, %v1635_v56  ;;  %v1612_v7 = vmul.f32 %v4194_v42, %v1591_v57  ;;  %3168 = vmatprep.mubr.msk.f32.mxu1 %vm1688_vm5, %v1665_v54 }
 0x3ec   : > { %v3453_v10 = vpop.eup %3452  ;;  %v1638_v13 = vadd.f32 1.0, %v3451_v62  ;;  %v1611_v63 = vmul.f32 %v4194_v42, %v1586_v48  ;;  %3169 = vmatmul.mubr.msk.f32.gmra.mrb[36].mxu1 %vm1688_vm5, %v1666_v60  ;;  %v1668_v58 = vmul.f32 %v1652_v61, %v4218_v2 }
 0x3ed   : > { %v1667_v14 = vmul.f32 %v1651_v3, %v4221_v4  ;;  %v1637_v49 = vadd.f32 1.0, %v3453_v10  ;;  %3462 = vtanh.f32 %v1612_v7 }
 0x3ee   : > { %v1654_v1 = vmul.f32 0.5, %v1638_v13  ;;  %3464 = vtanh.f32 %v1611_v63 }
 0x3ef   : > { %v3455_v40 = vpop.eup %3454  ;;  %v1653_v5 = vmul.f32 0.5, %v1637_v49  ;;  %3171 = vmatprep.mubr.msk.f32.mxu1 %vm1688_vm5, %v1667_v14 }
 0x3f0   : > { %v3457_v45 = vpop.eup %3456  ;;  %v1640_v16 = vadd.f32 1.0, %v3455_v40  ;;  %3172 = vmatmul.mubr.msk.f32.gmra.mrb[38].mxu1 %vm1688_vm5, %v1668_v58  ;;  %v1670_v47 = vmul.f32 %v1654_v1, %v4228_v17 }
 0x3f1   : > { %v1669_v42 = vmul.f32 %v1653_v5, %v4231_v55  ;;  %v1639_v53 = vadd.f32 1.0, %v3457_v45 }
 0x3f2   : > { %v1656_v4 = vmul.f32 0.5, %v1640_v16 }
 0x3f3   : > { %v3459_v18 = vpop.eup %3458  ;;  %v1655_v9 = vmul.f32 0.5, %v1639_v53  ;;  %3174 = vmatprep.mubr.msk.f32.mxu1 %vm1688_vm5, %v1669_v42 }
 0x3f4   : > { %v3461_v2 = vpop.eup %3460  ;;  %v1642_v19 = vadd.f32 1.0, %v3459_v18  ;;  %3175 = vmatmul.mubr.msk.f32.gmra.mrb[40].mxu1 %vm1688_vm5, %v1670_v47  ;;  %v1672_v22 = vmul.f32 %v1656_v4, %v4238_v26 }
 0x3f5   : > { %v1671_v0 = vmul.f32 %v1655_v9, %v4241_v28  ;;  %v1641_v11 = vadd.f32 1.0, %v3461_v2 }
 0x3f6   : > { %v1658_v6 = vmul.f32 0.5, %v1642_v19 }
 0x3f7   : > { %v3463_v12 = vpop.eup %3462  ;;  %v1657_v55 = vmul.f32 0.5, %v1641_v11  ;;  %3177 = vmatprep.mubr.msk.f32.mxu1 %vm1688_vm5, %v1671_v0 }
 0x3f8   : > { %v3465_v17 = vpop.eup %3464  ;;  %v1644_v24 = vadd.f32 1.0, %v3463_v12  ;;  %3178 = vmatmul.mubr.msk.f32.gmra.mrb[42].mxu1 %vm1688_vm5, %v1672_v22  ;;  %v1674_v51 = vmul.f32 %v1658_v6, %v4250_v30  ;;  %v1973_v30 = vld [vmem:[%s4859_s12 + $0x40] sm:$0xff] }
 0x3f9   : > { %v1673_v25 = vmul.f32 %v1657_v55, %v1576_v38  ;;  %v1643_v8 = vadd.f32 1.0, %v3465_v17  ;;  %v3312_v36 = vpack.c.bf16 %v1976_v37, %v1973_v30  ;;  %v3623_v38 = vmov 0.0  }
 0x3fa   : > { %v1660_v27 = vmul.f32 0.5, %v1644_v24  ;;  %2106 = vmatprep.mubr.f32.mxu0 %v3623_v38 }
 0x3fb   : > { %v1659_v23 = vmul.f32 0.5, %v1643_v8  ;;  %3180 = vmatprep.mubr.msk.f32.mxu1 %vm1688_vm5, %v1673_v25  ;;  %3313 = vmatprep.subr.bf16.mxu1 %v3312_v36 }
 0x3fc   : > { %3181 = vmatmul.mubr.msk.f32.gmra.mrb[44].mxu1 %vm1688_vm5, %v1674_v51  ;;  %v1676_v28 = vmul.f32 %v1660_v27, %v1591_v57 }
 0x3fd   : > { %v1675_v26 = vmul.f32 %v1659_v23, %v1586_v48  ;;  %3315 = vmatpush3.bf16.msra.mxu1 %v3312_v36 }
 0x3ff   : > { %3183 = vmatprep.mubr.msk.f32.mxu1 %vm1688_vm5, %v1675_v26 }
 0x400   : > { %3184 = vmatmul.mubr.msk.f32.gmra.mrb[46].mxu1 %vm1688_vm5, %v1676_v28 }
 0x4b7   : > { %v3164_v41 = vpop.f32.mrb[32].mxu1 }
 0x4b8   : > { %v1809_v44 = vadd.f32 %v3164_v41, %v4312_v39  ;;  %v1803_v46 = vpop.f32.mrb[33].mxu1 }
 0x4b9   : > { %v1804_v50 = vadd.f32 %v4312_v39, %v1803_v46 }
 0x4ba   : > { %v1886_v52 = vmul.f32 %v4314_v43, %v1809_v44 }
 0x4bb   : > { %v1885_v54 = vmul.f32 %v4314_v43, %v1804_v50  ;;  %v3167_v56 = vpop.f32.mrb[34].mxu1 }
 0x4bc   : > { %3466 = vtanh.f32 %v1886_v52  ;;  %v4321_v57 = vadd.f32 %v3167_v56, %v4312_v39  ;;  %v1813_v59 = vpop.f32.mrb[35].mxu1 }
 0x4bd   : > { %3468 = vtanh.f32 %v1885_v54  ;;  %v1814_v60 = vadd.f32 %v4312_v39, %v1813_v59 }
 0x4be   : > { %v1888_v61 = vmul.f32 %v4314_v43, %v4321_v57 }
 0x4bf   : > { %v1887_v48 = vmul.f32 %v4314_v43, %v1814_v60  ;;  %v3170_v62 = vpop.f32.mrb[36].mxu1 }
 0x4c0   : > { %3470 = vtanh.f32 %v1888_v61  ;;  %v4328_v3 = vadd.f32 %v3170_v62, %v4312_v39  ;;  %v1823_v7 = vpop.f32.mrb[37].mxu1 }
 0x4c1   : > { %3472 = vtanh.f32 %v1887_v48  ;;  %v4331_v10 = vadd.f32 %v4312_v39, %v1823_v7 }
 0x4c2   : > { %v1890_v13 = vmul.f32 %v4314_v43, %v4328_v3 }
 0x4c3   : > { %v1889_v63 = vmul.f32 %v4314_v43, %v4331_v10  ;;  %v3173_v14 = vpop.f32.mrb[38].mxu1 }
 0x4c4   : > { %3474 = vtanh.f32 %v1890_v13  ;;  %v4338_v49 = vadd.f32 %v3173_v14, %v4312_v39  ;;  %v1833_v58 = vpop.f32.mrb[39].mxu1 }
 0x4c5   : > { %3476 = vtanh.f32 %v1889_v63  ;;  %v4341_v1 = vadd.f32 %v4312_v39, %v1833_v58 }
 0x4c6   : > { %v3467_v40 = vpop.eup %3466  ;;  %v1892_v5 = vmul.f32 %v4314_v43, %v4338_v49 }
 0x4c7   : > { %v3469_v45 = vpop.eup %3468  ;;  %v1918_v16 = vadd.f32 1.0, %v3467_v40  ;;  %v1891_v42 = vmul.f32 %v4314_v43, %v4341_v1  ;;  %v3176_v53 = vpop.f32.mrb[40].mxu1 }
 0x4c8   : > { %v1917_v47 = vadd.f32 1.0, %v3469_v45  ;;  %3478 = vtanh.f32 %v1892_v5  ;;  %v4348_v4 = vadd.f32 %v3176_v53, %v4312_v39  ;;  %v1843_v18 = vpop.f32.mrb[41].mxu1 }
 0x4c9   : > { %v1934_v9 = vmul.f32 0.5, %v1918_v16  ;;  %3480 = vtanh.f32 %v1891_v42  ;;  %v4351_v2 = vadd.f32 %v4312_v39, %v1843_v18 }
 0x4ca   : > { %v3471_v19 = vpop.eup %3470  ;;  %v1933_v0 = vmul.f32 0.5, %v1917_v47  ;;  %v1894_v11 = vmul.f32 %v4314_v43, %v4348_v4 }
 0x4cb   : > { %v3473_v22 = vpop.eup %3472  ;;  %v1920_v6 = vadd.f32 1.0, %v3471_v19  ;;  %v1893_v12 = vmul.f32 %v4314_v43, %v4351_v2  ;;  %v3179_v55 = vpop.f32.mrb[42].mxu1  ;;  %v1950_v51 = vmul.f32 %v1934_v9, %v1809_v44 }
 0x4cc   : > { %v1949_v17 = vmul.f32 %v1933_v0, %v1804_v50  ;;  %v1919_v24 = vadd.f32 1.0, %v3473_v22  ;;  %3482 = vtanh.f32 %v1894_v11  ;;  %v4358_v25 = vadd.f32 %v3179_v55, %v4312_v39  ;;  %v1853_v8 = vpop.f32.mrb[43].mxu1 }
 0x4cd   : > { %v1936_v27 = vmul.f32 0.5, %v1920_v6  ;;  %3484 = vtanh.f32 %v1893_v12  ;;  %v4361_v23 = vadd.f32 %v4312_v39, %v1853_v8 }
 0x4ce   : > { %v3475_v26 = vpop.eup %3474  ;;  %v1935_v28 = vmul.f32 0.5, %v1919_v24  ;;  %v1896_v20 = vmul.f32 %v4314_v43, %v4358_v25  ;;  %2811 = vmatmul.mubr.msk.f32.vlgmr.msra.gmra.mrb[32].mxu0 %vm1688_vm5, %v1949_v17  ;;  %3194 = vmatprep.mubr.msk.f32.mxu1 %vm1688_vm5, %v1949_v17 }
 0x4cf   : > { %v3477_v21 = vpop.eup %3476  ;;  %v1922_v32 = vadd.f32 1.0, %v3475_v26  ;;  %v1895_v29 = vmul.f32 %v4314_v43, %v4361_v23  ;;  %v3182_v15 = vpop.f32.mrb[44].mxu1  ;;  %3195 = vmatmul.mubr.msk.f32.vlgmr.msra.gmra.mrb[48].mxu1 %vm1688_vm5, %v1950_v51  ;;  %2112 = vmatprep.mubr.f32.mxu0 %v3623_v38  ;;  %v1952_v31 = vmul.f32 %v1936_v27, %v4321_v57 }
 0x4d0   : > { %v1951_v33 = vmul.f32 %v1935_v28, %v1814_v60  ;;  %v1921_v34 = vadd.f32 1.0, %v3477_v21  ;;  %3486 = vtanh.f32 %v1896_v20  ;;  %v4372_v35 = vadd.f32 %v3182_v15, %v4312_v39  ;;  %v1863_v30 = vpop.f32.mrb[45].mxu1 }
 0x4d1   : > { %v1938_v37 = vmul.f32 0.5, %v1922_v32  ;;  %3488 = vtanh.f32 %v1895_v29  ;;  %v4376_v36 = vadd.f32 %v4312_v39, %v1863_v30  ;;  %v1979_v20 = vlaneseq  ;;  %v1977_v29 = vld [vmem:[%s4860_s13] sm:$0x7] }
 0x4d2   : > { %v3479_v41 = vpop.eup %3478  ;;  %v1937_v44 = vmul.f32 0.5, %v1921_v34  ;;  %v1898_v46 = vmul.f32 %v4314_v43, %v4372_v35  ;;  %2812 = vmatmul.mubr.msk.f32.gmra.mrb[34].mxu0 %vm1688_vm5, %v1950_v51  ;;  %3197 = vmatprep.mubr.msk.f32.mxu1 %vm1688_vm5, %v1951_v33 }
 0x4d3   : > { %v3481_v50 = vpop.eup %3480  ;;  %v1924_v52 = vadd.f32 1.0, %v3479_v41  ;;  %v1897_v54 = vmul.f32 %v4314_v43, %v4376_v36  ;;  %v3185_v56 = vpop.f32.mrb[46].mxu1  ;;  %3198 = vmatmul.mubr.msk.f32.gmra.mrb[50].mxu1 %vm1688_vm5, %v1952_v31  ;;  %2118 = vmatprep.mubr.f32.mxu0 %v3623_v38  ;;  %v1954_v48 = vmul.f32 %v1938_v37, %v4328_v3  ;;  %v1980_v21 = vshrl.u32 %v1979_v20, 7 }
 0x4d4   : > { %v1953_v57 = vmul.f32 %v1937_v44, %v4331_v10  ;;  %v1923_v59 = vadd.f32 1.0, %v3481_v50  ;;  %3490 = vtanh.f32 %v1898_v46  ;;  %v4388_v60 = vadd.f32 %v3185_v56, %v4312_v39  ;;  %v1873_v61 = vpop.f32.mrb[47].mxu1 }
 0x4d5   : > { %v1940_v62 = vmul.f32 0.5, %v1924_v52  ;;  %3492 = vtanh.f32 %v1897_v54  ;;  %v1874_v7 = vadd.f32 %v4312_v39, %v1873_v61  ;;  %v1981_v32 = vsub.s32 0, %v1980_v21 }
 0x4d6   : > { %v3483_v13 = vpop.eup %3482  ;;  %v1939_v63 = vmul.f32 0.5, %v1923_v59  ;;  %v1900_v14 = vmul.f32 %v4314_v43, %v4388_v60  ;;  %2813 = vmatmul.mubr.msk.f32.gmra.mrb[36].mxu0 %vm1688_vm5, %v1951_v33  ;;  %3200 = vmatprep.mubr.msk.f32.mxu1 %vm1688_vm5, %v1953_v57  ;;  %v1985_v15 = vsub.s32 1, %v1980_v21  ;;  %v1989_v33 = vsub.s32 2, %v1980_v21 }
 0x4d7   : > { %v3485_v10 = vpop.eup %3484  ;;  %v1926_v58 = vadd.f32 1.0, %v3483_v13  ;;  %v1899_v40 = vmul.f32 %v4314_v43, %v1874_v7  ;;  %3201 = vmatmul.mubr.msk.f32.gmra.mrb[52].mxu1 %vm1688_vm5, %v1954_v48  ;;  %2124 = vmatprep.mubr.f32.mxu0 %v3623_v38  ;;  %v1956_v5 = vmul.f32 %v1940_v62, %v4338_v49  ;;  %v4446_v34 = vrot.slane %v1977_v29, %v1981_v32 }
 0x4d8   : > { %v1955_v3 = vmul.f32 %v1939_v63, %v4341_v1  ;;  %v1925_v39 = vadd.f32 1.0, %v3485_v10  ;;  %3494 = vtanh.f32 %v1900_v14  ;;  %v4450_v30 = vrot.slane %v1977_v29, %v1989_v33 }
 0x4d9   : > { %v1942_v45 = vmul.f32 0.5, %v1926_v58  ;;  %3496 = vtanh.f32 %v1899_v40 }
 0x4da   : > { %v3487_v16 = vpop.eup %3486  ;;  %v1941_v42 = vmul.f32 0.5, %v1925_v39  ;;  %2814 = vmatmul.mubr.msk.f32.gmra.mrb[38].mxu0 %vm1688_vm5, %v1952_v31  ;;  %3203 = vmatprep.mubr.msk.f32.mxu1 %vm1688_vm5, %v1955_v3  ;;  %v4452_v31 = vstv %s2349_s15 }
 0x4db   : > { %v3489_v53 = vpop.eup %3488  ;;  %v1928_v43 = vadd.f32 1.0, %v3487_v16  ;;  %3204 = vmatmul.mubr.msk.f32.gmra.mrb[54].mxu1 %vm1688_vm5, %v1956_v5  ;;  %2130 = vmatprep.mubr.f32.mxu0 %v3623_v38  ;;  %v1958_v18 = vmul.f32 %v1942_v45, %v4348_v4 }
 0x4dc   : > { %v1957_v1 = vmul.f32 %v1941_v42, %v4351_v2  ;;  %v1927_v47 = vadd.f32 1.0, %v3489_v53 }
 0x4dd   : > { %v1944_v49 = vmul.f32 0.5, %v1928_v43 }
 0x4de   : > { %v3491_v9 = vpop.eup %3490  ;;  %v1943_v19 = vmul.f32 0.5, %v1927_v47  ;;  %2815 = vmatmul.mubr.msk.f32.gmra.mrb[40].mxu0 %vm1688_vm5, %v1953_v57  ;;  %3206 = vmatprep.mubr.msk.f32.mxu1 %vm1688_vm5, %v1957_v1 }
 0x4df   : > { %v3493_v0 = vpop.eup %3492  ;;  %v1930_v11 = vadd.f32 1.0, %v3491_v9  ;;  %3207 = vmatmul.mubr.msk.f32.gmra.mrb[56].mxu1 %vm1688_vm5, %v1958_v18  ;;  %2136 = vmatprep.mubr.f32.mxu0 %v3623_v38  ;;  %v1960_v2 = vmul.f32 %v1944_v49, %v4358_v25 }
 0x4e0   : > { %v1959_v22 = vmul.f32 %v1943_v19, %v4361_v23  ;;  %v1929_v6 = vadd.f32 1.0, %v3493_v0 }
 0x4e1   : > { %v1946_v12 = vmul.f32 0.5, %v1930_v11 }
 0x4e2   : > { %v3495_v4 = vpop.eup %3494  ;;  %v1945_v55 = vmul.f32 0.5, %v1929_v6  ;;  %2816 = vmatmul.mubr.msk.f32.gmra.mrb[42].mxu0 %vm1688_vm5, %v1954_v48  ;;  %3209 = vmatprep.mubr.msk.f32.mxu1 %vm1688_vm5, %v1959_v22 }
 0x4e3   : > { %v3497_v17 = vpop.eup %3496  ;;  %v1932_v24 = vadd.f32 1.0, %v3495_v4  ;;  %3210 = vmatmul.mubr.msk.f32.gmra.mrb[58].mxu1 %vm1688_vm5, %v1960_v2  ;;  %2142 = vmatprep.mubr.f32.mxu0 %v3623_v38  ;;  %v1962_v27 = vmul.f32 %v1946_v12, %v4372_v35  ;;  %v4448_v35 = vrot.slane %v1977_v29, %v1985_v15 }
 0x4e4   : > { %v1961_v8 = vmul.f32 %v1945_v55, %v4376_v36  ;;  %v1931_v51 = vadd.f32 1.0, %v3497_v17 }
 0x4e5   : > { %v1948_v23 = vmul.f32 0.5, %v1932_v24 }
 0x4e6   : > { %v1947_v25 = vmul.f32 0.5, %v1931_v51  ;;  %2817 = vmatmul.mubr.msk.f32.gmra.mrb[44].mxu0 %vm1688_vm5, %v1955_v3  ;;  %3212 = vmatprep.mubr.msk.f32.mxu1 %vm1688_vm5, %v1961_v8 }
 0x4e7   : > { %3213 = vmatmul.mubr.msk.f32.gmra.mrb[60].mxu1 %vm1688_vm5, %v1962_v27  ;;  %2148 = vmatprep.mubr.f32.mxu0 %v3623_v38  ;;  %v1964_v28 = vmul.f32 %v1948_v23, %v4388_v60 }
 0x4e8   : > { %v1963_v26 = vmul.f32 %v1947_v25, %v1874_v7 }
 0x4ea   : > { %2818 = vmatmul.mubr.msk.f32.gmra.mrb[46].mxu0 %vm1688_vm5, %v1956_v5  ;;  %3215 = vmatprep.mubr.msk.f32.mxu1 %vm1688_vm5, %v1963_v26 }
 0x4eb   : > { %3216 = vmatmul.mubr.msk.f32.gmra.mrb[62].mxu1 %vm1688_vm5, %v1964_v28  ;;  %2154 = vmatprep.mubr.f32.mxu0 %v3623_v38 }
 0x4ee   : > { %2819 = vmatmul.mubr.msk.f32.gmra.mrb[48].mxu0 %vm1688_vm5, %v1957_v1 }
 0x4ef   : > { %2160 = vmatprep.mubr.f32.mxu0 %v3623_v38 }
 0x4f2   : > { %2820 = vmatmul.mubr.msk.f32.gmra.mrb[50].mxu0 %vm1688_vm5, %v1958_v18 }
 0x4f3   : > { %2166 = vmatprep.mubr.f32.mxu0 %v3623_v38 }
 0x4f6   : > { %2821 = vmatmul.mubr.msk.f32.gmra.mrb[52].mxu0 %vm1688_vm5, %v1959_v22 }
 0x4f7   : > { %2172 = vmatprep.mubr.f32.mxu0 %v3623_v38 }
 0x4fa   : > { %2822 = vmatmul.mubr.msk.f32.gmra.mrb[54].mxu0 %vm1688_vm5, %v1960_v2 }
 0x4fb   : > { %2178 = vmatprep.mubr.f32.mxu0 %v3623_v38 }
 0x4fe   : > { %2823 = vmatmul.mubr.msk.f32.gmra.mrb[56].mxu0 %vm1688_vm5, %v1961_v8 }
 0x4ff   : > { %2184 = vmatprep.mubr.f32.mxu0 %v3623_v38 }
 0x502   : > { %2824 = vmatmul.mubr.msk.f32.gmra.mrb[58].mxu0 %vm1688_vm5, %v1962_v27 }
 0x503   : > { %2190 = vmatprep.mubr.f32.mxu0 %v3623_v38 }
 0x506   : > { %2825 = vmatmul.mubr.msk.f32.gmra.mrb[60].mxu0 %vm1688_vm5, %v1963_v26 }
 0x507   : > { %2196 = vmatprep.mubr.f32.mxu0 %v3623_v38 }
 0x50a   : > { %2826 = vmatmul.mubr.msk.f32.gmra.mrb[62].mxu0 %vm1688_vm5, %v1964_v28 }
 0x5a1   : > { %v2108_v38 = vpop.f32.mrb[32].mxu0 }
 0x5a2   : > { %v4455_v37 = vadd.f32 %v2108_v38, %v4446_v34  ;;  %v2110_v36 = vpop.f32.mrb[33].mxu0  ;;  %v3196_v41 = vpop.f32.mrb[48].mxu1 }
 0x5a3   : > { %v4458_v44 = vadd.f32 %v2110_v36, %v4448_v35  ;;  %v4461_v46 = vadd.f32 %v3196_v41, %v4450_v30  ;;  %v2269_v50 = vpop.f32.mrb[49].mxu1 }
 0x5a4   : > { %v2351_v52 = vmul.f32 %v4452_v31, %v4455_v37  ;;  %v4466_v54 = vadd.f32 %v2269_v50, %v4450_v30 }
 0x5a5   : > { %v2352_v56 = vmul.f32 %v4452_v31, %v4458_v44  ;;  %v2356_v57 = vmul.f32 %v4452_v31, %v4461_v46  ;;  %v2114_v59 = vpop.f32.mrb[34].mxu0 }
 0x5a6   : > { %3498 = vtanh.f32 %v2351_v52  ;;  %v2353_v60 = vmul.f32 %v4452_v31, %v4466_v54  ;;  %v4475_v61 = vadd.f32 %v2114_v59, %v4446_v34  ;;  %v2116_v48 = vpop.f32.mrb[35].mxu0  ;;  %v3199_v62 = vpop.f32.mrb[50].mxu1 }
 0x5a7   : > { %3500 = vtanh.f32 %v2352_v56  ;;  %v4478_v7 = vadd.f32 %v2116_v48, %v4448_v35  ;;  %v4481_v13 = vadd.f32 %v3199_v62, %v4450_v30  ;;  %v2279_v63 = vpop.f32.mrb[51].mxu1 }
 0x5a8   : > { %3502 = vtanh.f32 %v2356_v57  ;;  %v2354_v14 = vmul.f32 %v4452_v31, %v4475_v61  ;;  %v4486_v10 = vadd.f32 %v2279_v63, %v4450_v30 }
 0x5a9   : > { %3504 = vtanh.f32 %v2353_v60  ;;  %v2355_v58 = vmul.f32 %v4452_v31, %v4478_v7  ;;  %v2362_v40 = vmul.f32 %v4452_v31, %v4481_v13  ;;  %v2120_v3 = vpop.f32.mrb[36].mxu0 }
 0x5aa   : > { %3506 = vtanh.f32 %v2354_v14  ;;  %v2359_v39 = vmul.f32 %v4452_v31, %v4486_v10  ;;  %v4495_v5 = vadd.f32 %v2120_v3, %v4446_v34  ;;  %v2122_v45 = vpop.f32.mrb[37].mxu0  ;;  %v3202_v16 = vpop.f32.mrb[52].mxu1 }
 0x5ab   : > { %3508 = vtanh.f32 %v2355_v58  ;;  %v4498_v42 = vadd.f32 %v2122_v45, %v4448_v35  ;;  %v4501_v53 = vadd.f32 %v3202_v16, %v4450_v30  ;;  %v2289_v43 = vpop.f32.mrb[53].mxu1 }
 0x5ac   : > { %3510 = vtanh.f32 %v2362_v40  ;;  %v2357_v1 = vmul.f32 %v4452_v31, %v4495_v5  ;;  %v4506_v47 = vadd.f32 %v2289_v43, %v4450_v30 }
 0x5ad   : > { %3512 = vtanh.f32 %v2359_v39  ;;  %v2358_v18 = vmul.f32 %v4452_v31, %v4498_v42  ;;  %v2368_v49 = vmul.f32 %v4452_v31, %v4501_v53  ;;  %v2126_v9 = vpop.f32.mrb[38].mxu0 }
 0x5ae   : > { %3514 = vtanh.f32 %v2357_v1  ;;  %v2365_v19 = vmul.f32 %v4452_v31, %v4506_v47  ;;  %v4515_v0 = vadd.f32 %v2126_v9, %v4446_v34  ;;  %v2128_v11 = vpop.f32.mrb[39].mxu0  ;;  %v3205_v22 = vpop.f32.mrb[54].mxu1 }
 0x5af   : > { %3516 = vtanh.f32 %v2358_v18  ;;  %v4518_v6 = vadd.f32 %v2128_v11, %v4448_v35  ;;  %v4521_v2 = vadd.f32 %v3205_v22, %v4450_v30  ;;  %v2299_v12 = vpop.f32.mrb[55].mxu1 }
 0x5b0   : > { %v3499_v4 = vpop.eup %3498  ;;  %3518 = vtanh.f32 %v2368_v49  ;;  %v2360_v55 = vmul.f32 %v4452_v31, %v4515_v0  ;;  %v4527_v17 = vadd.f32 %v2299_v12, %v4450_v30 }
 0x5b1   : > { %v3501_v24 = vpop.eup %3500  ;;  %v2447_v8 = vadd.f32 1.0, %v3499_v4  ;;  %3520 = vtanh.f32 %v2365_v19  ;;  %v2361_v51 = vmul.f32 %v4452_v31, %v4518_v6  ;;  %v2374_v27 = vmul.f32 %v4452_v31, %v4521_v2  ;;  %v2132_v23 = vpop.f32.mrb[40].mxu0 }
 0x5b2   : > { %v3503_v25 = vpop.eup %3502  ;;  %v2448_v26 = vadd.f32 1.0, %v3501_v24  ;;  %3522 = vtanh.f32 %v2360_v55  ;;  %v2371_v28 = vmul.f32 %v4452_v31, %v4527_v17  ;;  %v4536_v20 = vadd.f32 %v2132_v23, %v4446_v34  ;;  %v2134_v21 = vpop.f32.mrb[41].mxu0 }
 0x5b3   : > { %v3208_v32 = vpop.f32.mrb[56].mxu1  ;;  %v3505_v29 = vpop.eup %3504  ;;  %v2495_v15 = vmul.f32 0.5, %v2447_v8  ;;  %v2452_v33 = vadd.f32 1.0, %v3503_v25  ;;  %3524 = vtanh.f32 %v2361_v51  ;;  %v4539_v38 = vadd.f32 %v2134_v21, %v4448_v35 }
 0x5b4   : > { %v2309_v36 = vpop.f32.mrb[57].mxu1  ;;  %v3507_v41 = vpop.eup %3506  ;;  %v2496_v50 = vmul.f32 0.5, %v2448_v26  ;;  %v2449_v52 = vadd.f32 1.0, %v3505_v29  ;;  %3526 = vtanh.f32 %v2374_v27  ;;  %v2363_v56 = vmul.f32 %v4452_v31, %v4536_v20 }
 0x5b5   : > { %v3509_v57 = vpop.eup %3508  ;;  %v2543_v59 = vmul.f32 %v2495_v15, %v4455_v37  ;;  %v2500_v60 = vmul.f32 0.5, %v2452_v33  ;;  %v2450_v48 = vadd.f32 1.0, %v3507_v41  ;;  %3528 = vtanh.f32 %v2371_v28  ;;  %v2138_v62 = vpop.f32.mrb[42].mxu0 }
 0x5b6   : > { %v3511_v63 = vpop.eup %3510  ;;  %v2544_v14 = vmul.f32 %v2496_v50, %v4458_v44  ;;  %v2497_v58 = vmul.f32 0.5, %v2449_v52  ;;  %v2451_v40 = vadd.f32 1.0, %v3509_v57  ;;  %3530 = vtanh.f32 %v2363_v56  ;;  %v4550_v3 = vpop.f32.mrb[43].mxu0 }
 0x5b7   : > { %v4552_v39 = vpop.f32.mrb[58].mxu1  ;;  %v3513_v45 = vpop.eup %3512  ;;  %2591 = vst [vmem:[%s4544_s27] sm:$0xff] %v2543_v59  ;;  %v2548_v37 = vmul.f32 %v2500_v60, %v4461_v46  ;;  %v2498_v16 = vmul.f32 0.5, %v2450_v48  ;;  %v2458_v43 = vadd.f32 1.0, %v3511_v63  ;;  %v2364_v1 = vmul.f32 %v4452_v31, %v4539_v38 }
 0x5b8   : > { %v4558_v18 = vpop.f32.mrb[59].mxu1  ;;  %v3515_v44 = vpop.eup %3514  ;;  %2592 = vst [vmem:[%s4544_s27 + $0x8] sm:$0xff] %v2544_v14  ;;  %v2545_v49 = vmul.f32 %v2497_v58, %v4466_v54  ;;  %v2499_v9 = vmul.f32 0.5, %v2451_v40  ;;  %v2455_v19 = vadd.f32 1.0, %v3513_v45  ;;  %v4563_v11 = vadd.f32 %v3208_v32, %v4450_v30 }
 0x5b9   : > { %v3517_v22 = vpop.eup %3516  ;;  %2597 = vst.msk [vmem:[%s4544_s27 + $0x28] sm:$0xff] %vm2593_vm6, %v2548_v37  ;;  %v2546_v46 = vmul.f32 %v2498_v16, %v4475_v61  ;;  %v2506_v12 = vmul.f32 0.5, %v2458_v43  ;;  %v2453_v4 = vadd.f32 1.0, %v3515_v44  ;;  %3532 = vtanh.f32 %v2364_v1  ;;  %v4568_v55 = vpop.f32.mrb[44].mxu0 }
 0x5ba   : > { %v3519_v24 = vpop.eup %3518  ;;  %2594 = vst.msk [vmem:[%s4544_s27 + $0x10] sm:$0xff] %vm2593_vm6, %v2545_v49  ;;  %v2547_v54 = vmul.f32 %v2499_v9, %v4478_v7  ;;  %v2503_v8 = vmul.f32 0.5, %v2455_v19  ;;  %v2454_v51 = vadd.f32 1.0, %v3517_v22  ;;  %v2380_v27 = vmul.f32 %v4452_v31, %v4563_v11  ;;  %v4575_v23 = vpop.f32.mrb[45].mxu0 }
 0x5bb   : > { %v4577_v61 = vpop.f32.mrb[60].mxu1  ;;  %v3521_v25 = vpop.eup %3520  ;;  %2595 = vst [vmem:[%s4544_s27 + $0x18] sm:$0xff] %v2546_v46  ;;  %v2554_v26 = vmul.f32 %v2506_v12, %v4481_v13  ;;  %v2501_v28 = vmul.f32 0.5, %v2453_v4  ;;  %v2464_v21 = vadd.f32 1.0, %v3519_v24  ;;  %v4582_v32 = vadd.f32 %v2309_v36, %v4450_v30 }
 0x5bc   : > { %v4584_v7 = vpop.f32.mrb[61].mxu1  ;;  %v3523_v29 = vpop.eup %3522  ;;  %2596 = vst [vmem:[%s4544_s27 + $0x20] sm:$0xff] %v2547_v54  ;;  %v2551_v15 = vmul.f32 %v2503_v8, %v4486_v10  ;;  %v2502_v33 = vmul.f32 0.5, %v2454_v51  ;;  %v2461_v41 = vadd.f32 1.0, %v3521_v25  ;;  %3534 = vtanh.f32 %v2380_v27 }
 0x5bd   : > { %v3525_v50 = vpop.eup %3524  ;;  %2603 = vst.msk [vmem:[%s4544_s27 + $0x58] sm:$0xff] %vm2593_vm6, %v2554_v26  ;;  %v2549_v13 = vmul.f32 %v2501_v28, %v4495_v5  ;;  %v2512_v52 = vmul.f32 0.5, %v2464_v21  ;;  %v2456_v56 = vadd.f32 1.0, %v3523_v29  ;;  %v2377_v36 = vmul.f32 %v4452_v31, %v4582_v32  ;;  %v4593_v57 = vpop.f32.mrb[46].mxu0 }
 0x5be   : > { %v3527_v59 = vpop.eup %3526  ;;  %2600 = vst.msk [vmem:[%s4544_s27 + $0x40] sm:$0xff] %vm2593_vm6, %v2551_v15  ;;  %v2550_v10 = vmul.f32 %v2502_v33, %v4498_v42  ;;  %v2509_v60 = vmul.f32 0.5, %v2461_v41  ;;  %v2457_v48 = vadd.f32 1.0, %v3525_v50  ;;  %v4599_v63 = vadd.f32 %v2138_v62, %v4446_v34  ;;  %v4601_v5 = vpop.f32.mrb[47].mxu0 }
 0x5bf   : > { %v4603_v14 = vpop.f32.mrb[62].mxu1  ;;  %v3529_v58 = vpop.eup %3528  ;;  %2598 = vst [vmem:[%s4544_s27 + $0x30] sm:$0xff] %v2549_v13  ;;  %v2560_v40 = vmul.f32 %v2512_v52, %v4501_v53  ;;  %v2504_v45 = vmul.f32 0.5, %v2456_v56  ;;  %v2470_v37 = vadd.f32 1.0, %v3527_v59  ;;  %3536 = vtanh.f32 %v2377_v36 }
 0x5c0   : > { %v4607_v16 = vpop.f32.mrb[63].mxu1  ;;  %v3531_v42 = vpop.eup %3530  ;;  %2599 = vst [vmem:[%s4544_s27 + $0x38] sm:$0xff] %v2550_v10  ;;  %v2557_v62 = vmul.f32 %v2509_v60, %v4506_v47  ;;  %v2505_v43 = vmul.f32 0.5, %v2457_v48  ;;  %v2467_v1 = vadd.f32 1.0, %v3529_v58  ;;  %v2366_v44 = vmul.f32 %v4452_v31, %v4599_v63 }
 0x5c1   : > { %2609 = vst.msk [vmem:[%s4544_s27 + $0x88] sm:$0xff] %vm2593_vm6, %v2560_v40  ;;  %v2552_v53 = vmul.f32 %v2504_v45, %v4515_v0  ;;  %v2518_v49 = vmul.f32 0.5, %v2470_v37  ;;  %v2459_v9 = vadd.f32 1.0, %v3531_v42  ;;  %v4618_v19 = vadd.f32 %v4550_v3, %v4448_v35  ;;  %v2156_v22 = vpop.f32.mrb[48].mxu0 }
 0x5c2   : > { %2606 = vst.msk [vmem:[%s4544_s27 + $0x70] sm:$0xff] %vm2593_vm6, %v2557_v62  ;;  %v2553_v47 = vmul.f32 %v2505_v43, %v4518_v6  ;;  %v2515_v46 = vmul.f32 0.5, %v2467_v1  ;;  %3538 = vtanh.f32 %v2366_v44  ;;  %v4625_v12 = vadd.f32 %v4552_v39, %v4450_v30  ;;  %v2158_v0 = vpop.f32.mrb[49].mxu0 }
 0x5c3   : > { %v3533_v4 = vpop.eup %3532  ;;  %2601 = vst [vmem:[%s4544_s27 + $0x48] sm:$0xff] %v2552_v53  ;;  %v2566_v24 = vmul.f32 %v2518_v49, %v4521_v2  ;;  %v2507_v3 = vmul.f32 0.5, %v2459_v9  ;;  %v2367_v54 = vmul.f32 %v4452_v31, %v4618_v19  ;;  %v4633_v6 = vadd.f32 %v4558_v18, %v4450_v30 }
 0x5c4   : > { %2602 = vst [vmem:[%s4544_s27 + $0x50] sm:$0xff] %v2553_v47  ;;  %v2563_v8 = vmul.f32 %v2515_v46, %v4527_v17  ;;  %v2460_v51 = vadd.f32 1.0, %v3533_v4  ;;  %v2386_v39 = vmul.f32 %v4452_v31, %v4625_v12  ;;  %v4641_v2 = vadd.f32 %v4568_v55, %v4446_v34 }
 0x5c5   : > { %2615 = vst.msk [vmem:[%s4544_s27 + $0xb8] sm:$0xff] %vm2593_vm6, %v2566_v24  ;;  %v2555_v27 = vmul.f32 %v2507_v3, %v4536_v20  ;;  %3540 = vtanh.f32 %v2367_v54  ;;  %v2383_v18 = vmul.f32 %v4452_v31, %v4633_v6  ;;  %v4650_v17 = vadd.f32 %v4575_v23, %v4448_v35  ;;  %v2162_v25 = vpop.f32.mrb[50].mxu0 }
 0x5c6   : > { %v3535_v26 = vpop.eup %3534  ;;  %2612 = vst.msk [vmem:[%s4544_s27 + $0xa0] sm:$0xff] %vm2593_vm6, %v2563_v8  ;;  %v2508_v28 = vmul.f32 0.5, %v2460_v51  ;;  %3542 = vtanh.f32 %v2386_v39  ;;  %v2369_v55 = vmul.f32 %v4452_v31, %v4641_v2  ;;  %v4658_v20 = vadd.f32 %v4577_v61, %v4450_v30  ;;  %v2164_v21 = vpop.f32.mrb[51].mxu0 }
 0x5c7   : > { %2604 = vst [vmem:[%s4544_s27 + $0x60] sm:$0xff] %v2555_v27  ;;  %v2476_v29 = vadd.f32 1.0, %v3535_v26  ;;  %3544 = vtanh.f32 %v2383_v18  ;;  %v2370_v23 = vmul.f32 %v4452_v31, %v4650_v17  ;;  %v4665_v15 = vadd.f32 %v4584_v7, %v4450_v30 }
 0x5c8   : > { %v2556_v33 = vmul.f32 %v2508_v28, %v4539_v38  ;;  %3546 = vtanh.f32 %v2369_v55  ;;  %v2392_v41 = vmul.f32 %v4452_v31, %v4658_v20  ;;  %v4672_v61 = vadd.f32 %v4593_v57, %v4446_v34 }
 0x5c9   : > { %v3537_v50 = vpop.eup %3536  ;;  %v2524_v13 = vmul.f32 0.5, %v2476_v29  ;;  %3548 = vtanh.f32 %v2370_v23  ;;  %v2389_v52 = vmul.f32 %v4452_v31, %v4665_v15  ;;  %v4678_v7 = vadd.f32 %v4601_v5, %v4448_v35  ;;  %v2168_v56 = vpop.f32.mrb[52].mxu0 }
 0x5ca   : > { %2605 = vst [vmem:[%s4544_s27 + $0x68] sm:$0xff] %v2556_v33  ;;  %v2473_v38 = vadd.f32 1.0, %v3537_v50  ;;  %3550 = vtanh.f32 %v2392_v41  ;;  %v2372_v36 = vmul.f32 %v4452_v31, %v4672_v61  ;;  %v4685_v57 = vadd.f32 %v4603_v14, %v4450_v30  ;;  %v2170_v59 = vpop.f32.mrb[53].mxu0 }
 0x5cb   : > { %v2572_v10 = vmul.f32 %v2524_v13, %v4563_v11  ;;  %3552 = vtanh.f32 %v2389_v52  ;;  %v2373_v60 = vmul.f32 %v4452_v31, %v4678_v7  ;;  %v4692_v48 = vadd.f32 %v4607_v16, %v4450_v30 }
 0x5cc   : > { %v3539_v5 = vpop.eup %3538  ;;  %v2521_v58 = vmul.f32 0.5, %v2473_v38  ;;  %3554 = vtanh.f32 %v2372_v36  ;;  %v2398_v40 = vmul.f32 %v4452_v31, %v4685_v57  ;;  %v4697_v14 = vadd.f32 %v2156_v22, %v4446_v34 }
 0x5cd   : > { %2621 = vst.msk [vmem:[%s4544_s27 + $0xe8] sm:$0xff] %vm2593_vm6, %v2572_v10  ;;  %v2462_v11 = vadd.f32 1.0, %v3539_v5  ;;  %3556 = vtanh.f32 %v2373_v60  ;;  %v2395_v45 = vmul.f32 %v4452_v31, %v4692_v48  ;;  %v4704_v30 = vadd.f32 %v2158_v0, %v4448_v35  ;;  %v2174_v37 = vpop.f32.mrb[54].mxu0 }
 0x5ce   : > { %v2569_v16 = vmul.f32 %v2521_v58, %v4582_v32  ;;  %3558 = vtanh.f32 %v2398_v40  ;;  %v2375_v42 = vmul.f32 %v4452_v31, %v4697_v14  ;;  %v4710_v62 = vadd.f32 %v2162_v25, %v4446_v34  ;;  %v4712_v43 = vpop.f32.mrb[55].mxu0 }
 0x5cf   : > { %v3541_v1 = vpop.eup %3540  ;;  %v2510_v44 = vmul.f32 0.5, %v2462_v11  ;;  %3560 = vtanh.f32 %v2395_v45  ;;  %v2376_v53 = vmul.f32 %v4452_v31, %v4704_v30  ;;  %v4717_v49 = vadd.f32 %v2164_v21, %v4448_v35 }
 0x5d0   : > { %v3543_v9 = vpop.eup %3542  ;;  %2618 = vst.msk [vmem:[%s4544_s27 + $0xd0] sm:$0xff] %vm2593_vm6, %v2569_v16  ;;  %v2463_v32 = vadd.f32 1.0, %v3541_v1  ;;  %3562 = vtanh.f32 %v2375_v42  ;;  %v2378_v22 = vmul.f32 %v4452_v31, %v4710_v62  ;;  %v4724_v47 = vadd.f32 %v2168_v56, %v4446_v34 }
 0x5d1   : > { %v3545_v46 = vpop.eup %3544  ;;  %v2558_v0 = vmul.f32 %v2510_v44, %v4599_v63  ;;  %v2482_v4 = vadd.f32 1.0, %v3543_v9  ;;  %3564 = vtanh.f32 %v2376_v53  ;;  %v2379_v24 = vmul.f32 %v4452_v31, %v4717_v49  ;;  %v4729_v3 = vpop.f32.mrb[56].mxu0 }
 0x5d2   : > { %v3547_v54 = vpop.eup %3546  ;;  %v2511_v8 = vmul.f32 0.5, %v2463_v32  ;;  %v2479_v51 = vadd.f32 1.0, %v3545_v46  ;;  %3566 = vtanh.f32 %v2378_v22  ;;  %v2381_v39 = vmul.f32 %v4452_v31, %v4724_v47  ;;  %v4733_v27 = vpop.f32.mrb[57].mxu0 }
 0x5d3   : > { %v3549_v18 = vpop.eup %3548  ;;  %2607 = vst [vmem:[%s4544_s27 + $0x78] sm:$0xff] %v2558_v0  ;;  %v2530_v25 = vmul.f32 0.5, %v2482_v4  ;;  %v2465_v63 = vadd.f32 1.0, %v3547_v54  ;;  %3568 = vtanh.f32 %v2379_v24  ;;  %v4737_v26 = vadd.f32 %v2170_v59, %v4448_v35 }
 0x5d4   : > { %v3551_v28 = vpop.eup %3550  ;;  %v2559_v55 = vmul.f32 %v2511_v8, %v4618_v19  ;;  %v2527_v21 = vmul.f32 0.5, %v2479_v51  ;;  %v2466_v29 = vadd.f32 1.0, %v3549_v18  ;;  %3570 = vtanh.f32 %v2381_v39 }
 0x5d5   : > { %v3553_v23 = vpop.eup %3552  ;;  %v2578_v33 = vmul.f32 %v2530_v25, %v4625_v12  ;;  %v2513_v41 = vmul.f32 0.5, %v2465_v63  ;;  %v2488_v50 = vadd.f32 1.0, %v3551_v28  ;;  %v2382_v13 = vmul.f32 %v4452_v31, %v4737_v26  ;;  %v4743_v52 = vpop.f32.mrb[58].mxu0 }
 0x5d6   : > { %v3555_v56 = vpop.eup %3554  ;;  %2608 = vst [vmem:[%s4544_s27 + $0x80] sm:$0xff] %v2559_v55  ;;  %v2575_v38 = vmul.f32 %v2527_v21, %v4633_v6  ;;  %v2514_v19 = vmul.f32 0.5, %v2466_v29  ;;  %v2485_v36 = vadd.f32 1.0, %v3553_v23  ;;  %v4748_v59 = vadd.f32 %v2174_v37, %v4446_v34  ;;  %v4750_v10 = vpop.f32.mrb[59].mxu0 }
 0x5d7   : > { %v3557_v12 = vpop.eup %3556  ;;  %2627 = vst.msk [vmem:[%s4544_s27 + $0x118] sm:$0xff] %vm2593_vm6, %v2578_v33  ;;  %v2561_v60 = vmul.f32 %v2513_v41, %v4641_v2  ;;  %v2536_v5 = vmul.f32 0.5, %v2488_v50  ;;  %v2468_v58 = vadd.f32 1.0, %v3555_v56  ;;  %3572 = vtanh.f32 %v2382_v13 }
 0x5d8   : > { %v3559_v40 = vpop.eup %3558  ;;  %2624 = vst.msk [vmem:[%s4544_s27 + $0x100] sm:$0xff] %vm2593_vm6, %v2575_v38  ;;  %v2562_v6 = vmul.f32 %v2514_v19, %v4650_v17  ;;  %v2533_v11 = vmul.f32 0.5, %v2485_v36  ;;  %v2469_v45 = vadd.f32 1.0, %v3557_v12  ;;  %v2384_v37 = vmul.f32 %v4452_v31, %v4748_v59 }
 0x5d9   : > { %v3561_v16 = vpop.eup %3560  ;;  %2610 = vst [vmem:[%s4544_s27 + $0x90] sm:$0xff] %v2561_v60  ;;  %v2584_v42 = vmul.f32 %v2536_v5, %v4658_v20  ;;  %v2516_v2 = vmul.f32 0.5, %v2468_v58  ;;  %v2494_v1 = vadd.f32 1.0, %v3559_v40  ;;  %v4764_v44 = vadd.f32 %v4712_v43, %v4448_v35  ;;  %v2192_v53 = vpop.f32.mrb[60].mxu0 }
 0x5da   : > { %v3563_v9 = vpop.eup %3562  ;;  %2611 = vst [vmem:[%s4544_s27 + $0x98] sm:$0xff] %v2562_v6  ;;  %v2581_v17 = vmul.f32 %v2533_v11, %v4665_v15  ;;  %v2517_v32 = vmul.f32 0.5, %v2469_v45  ;;  %v2491_v22 = vadd.f32 1.0, %v3561_v16  ;;  %3574 = vtanh.f32 %v2384_v37  ;;  %v2194_v46 = vpop.f32.mrb[61].mxu0 }
 0x5db   : > { %v3565_v0 = vpop.eup %3564  ;;  %2633 = vst.msk [vmem:[%s4544_s27 + $0x148] sm:$0xff] %vm2593_vm6, %v2584_v42  ;;  %v2564_v20 = vmul.f32 %v2516_v2, %v4672_v61  ;;  %v2542_v4 = vmul.f32 0.5, %v2494_v1  ;;  %v2471_v24 = vadd.f32 1.0, %v3563_v9  ;;  %v2385_v43 = vmul.f32 %v4452_v31, %v4764_v44 }
 0x5dc   : > { %v3567_v54 = vpop.eup %3566  ;;  %2630 = vst.msk [vmem:[%s4544_s27 + $0x130] sm:$0xff] %vm2593_vm6, %v2581_v17  ;;  %v2565_v15 = vmul.f32 %v2517_v32, %v4678_v7  ;;  %v2539_v8 = vmul.f32 0.5, %v2491_v22  ;;  %v2472_v51 = vadd.f32 1.0, %v3565_v0  ;;  %v4778_v39 = vadd.f32 %v4729_v3, %v4446_v34 }
 0x5dd   : > { %v3569_v18 = vpop.eup %3568  ;;  %2613 = vst [vmem:[%s4544_s27 + $0xa8] sm:$0xff] %v2564_v20  ;;  %v2590_v61 = vmul.f32 %v2542_v4, %v4685_v57  ;;  %v2519_v25 = vmul.f32 0.5, %v2471_v24  ;;  %v2474_v63 = vadd.f32 1.0, %v3567_v54  ;;  %3576 = vtanh.f32 %v2385_v43  ;;  %v2198_v28 = vpop.f32.mrb[62].mxu0 }
 0x5de   : > { %v3571_v55 = vpop.eup %3570  ;;  %2614 = vst [vmem:[%s4544_s27 + $0xb0] sm:$0xff] %v2565_v15  ;;  %v2587_v7 = vmul.f32 %v2539_v8, %v4692_v48  ;;  %v2520_v21 = vmul.f32 0.5, %v2472_v51  ;;  %v2475_v29 = vadd.f32 1.0, %v3569_v18  ;;  %v2387_v3 = vmul.f32 %v4452_v31, %v4778_v39  ;;  %v2200_v23 = vpop.f32.mrb[63].mxu0 }
 0x5df   : > { %2639 = vst.msk [vmem:[%s4544_s27 + $0x178] sm:$0xff] %vm2593_vm6, %v2590_v61  ;;  %v2567_v57 = vmul.f32 %v2519_v25, %v4697_v14  ;;  %v2522_v33 = vmul.f32 0.5, %v2474_v63  ;;  %v2477_v41 = vadd.f32 1.0, %v3571_v55  ;;  %v4791_v50 = vadd.f32 %v4733_v27, %v4448_v35 }
 0x5e0   : > { %2636 = vst.msk [vmem:[%s4544_s27 + $0x160] sm:$0xff] %vm2593_vm6, %v2587_v7  ;;  %v2568_v48 = vmul.f32 %v2520_v21, %v4704_v30  ;;  %v2523_v13 = vmul.f32 0.5, %v2475_v29  ;;  %3578 = vtanh.f32 %v2387_v3  ;;  %v4798_v56 = vadd.f32 %v4743_v52, %v4446_v34 }
 0x5e1   : > { %v3573_v38 = vpop.eup %3572  ;;  %2616 = vst [vmem:[%s4544_s27 + $0xc0] sm:$0xff] %v2567_v57  ;;  %v2570_v14 = vmul.f32 %v2522_v33, %v4710_v62  ;;  %v2525_v19 = vmul.f32 0.5, %v2477_v41  ;;  %v2388_v27 = vmul.f32 %v4452_v31, %v4791_v50  ;;  %v4806_v36 = vadd.f32 %v4750_v10, %v4448_v35 }
 0x5e2   : > { %2617 = vst [vmem:[%s4544_s27 + $0xc8] sm:$0xff] %v2568_v48  ;;  %v2571_v30 = vmul.f32 %v2523_v13, %v4717_v49  ;;  %v2478_v12 = vadd.f32 1.0, %v3573_v38  ;;  %v2390_v52 = vmul.f32 %v4452_v31, %v4798_v56  ;;  %v2193_v60 = vadd.f32 %v2192_v53, %v4446_v34 }
 0x5e3   : > { %2619 = vst [vmem:[%s4544_s27 + $0xd8] sm:$0xff] %v2570_v14  ;;  %v2573_v62 = vmul.f32 %v2525_v19, %v4724_v47  ;;  %3580 = vtanh.f32 %v2388_v27  ;;  %v2391_v5 = vmul.f32 %v4452_v31, %v4806_v36  ;;  %v2195_v10 = vadd.f32 %v2194_v46, %v4448_v35 }
 0x5e4   : > { %v3575_v58 = vpop.eup %3574  ;;  %2620 = vst [vmem:[%s4544_s27 + $0xe0] sm:$0xff] %v2571_v30  ;;  %v2526_v40 = vmul.f32 0.5, %v2478_v12  ;;  %3582 = vtanh.f32 %v2390_v52  ;;  %v2393_v49 = vmul.f32 %v4452_v31, %v2193_v60  ;;  %v2199_v6 = vadd.f32 %v2198_v28, %v4446_v34 }
 0x5e5   : > { %2622 = vst [vmem:[%s4544_s27 + $0xf0] sm:$0xff] %v2573_v62  ;;  %v2480_v11 = vadd.f32 1.0, %v3575_v58  ;;  %3584 = vtanh.f32 %v2391_v5  ;;  %v2394_v47 = vmul.f32 %v4452_v31, %v2195_v10  ;;  %v2201_v45 = vadd.f32 %v2200_v23, %v4448_v35 }
 0x5e6   : > { %v2574_v37 = vmul.f32 %v2526_v40, %v4737_v26  ;;  %3586 = vtanh.f32 %v2393_v49  ;;  %v2396_v16 = vmul.f32 %v4452_v31, %v2199_v6 }
 0x5e7   : > { %v3577_v42 = vpop.eup %3576  ;;  %v2528_v2 = vmul.f32 0.5, %v2480_v11  ;;  %3588 = vtanh.f32 %v2394_v47  ;;  %v2397_v1 = vmul.f32 %v4452_v31, %v2201_v45 }
 0x5e8   : > { %2623 = vst [vmem:[%s4544_s27 + $0xf8] sm:$0xff] %v2574_v37  ;;  %v2481_v34 = vadd.f32 1.0, %v3577_v42  ;;  %3590 = vtanh.f32 %v2396_v16 }
 0x5e9   : > { %v2576_v53 = vmul.f32 %v2528_v2, %v4748_v59  ;;  %3592 = vtanh.f32 %v2397_v1 }
 0x5ea   : > { %v3579_v9 = vpop.eup %3578  ;;  %v2529_v17 = vmul.f32 0.5, %v2481_v34 }
 0x5eb   : > { %2625 = vst [vmem:[%s4544_s27 + $0x108] sm:$0xff] %v2576_v53  ;;  %v2483_v35 = vadd.f32 1.0, %v3579_v9 }
 0x5ec   : > { %v2577_v26 = vmul.f32 %v2529_v17, %v4764_v44 }
 0x5ed   : > { %v3581_v32 = vpop.eup %3580  ;;  %v2531_v22 = vmul.f32 0.5, %v2483_v35 }
 0x5ee   : > { %v3583_v46 = vpop.eup %3582  ;;  %2626 = vst [vmem:[%s4544_s27 + $0x110] sm:$0xff] %v2577_v26  ;;  %v2484_v0 = vadd.f32 1.0, %v3581_v32 }
 0x5ef   : > { %v3585_v20 = vpop.eup %3584  ;;  %v2579_v31 = vmul.f32 %v2531_v22, %v4778_v39  ;;  %v2486_v4 = vadd.f32 1.0, %v3583_v46 }
 0x5f0   : > { %v3587_v24 = vpop.eup %3586  ;;  %v2532_v59 = vmul.f32 0.5, %v2484_v0  ;;  %v2487_v43 = vadd.f32 1.0, %v3585_v20 }
 0x5f1   : > { %v3589_v54 = vpop.eup %3588  ;;  %2628 = vst [vmem:[%s4544_s27 + $0x120] sm:$0xff] %v2579_v31  ;;  %v2534_v15 = vmul.f32 0.5, %v2486_v4  ;;  %v2489_v8 = vadd.f32 1.0, %v3587_v24 }
 0x5f2   : > { %v3591_v44 = vpop.eup %3590  ;;  %v2580_v51 = vmul.f32 %v2532_v59, %v4791_v50  ;;  %v2535_v18 = vmul.f32 0.5, %v2487_v43  ;;  %v2490_v61 = vadd.f32 1.0, %v3589_v54 }
 0x5f3   : > { %v3593_v25 = vpop.eup %3592  ;;  %v2582_v39 = vmul.f32 %v2534_v15, %v4798_v56  ;;  %v2537_v63 = vmul.f32 0.5, %v2489_v8  ;;  %v2492_v28 = vadd.f32 1.0, %v3591_v44 }
 0x5f4   : > { %2629 = vst [vmem:[%s4544_s27 + $0x128] sm:$0xff] %v2580_v51  ;;  %v2583_v55 = vmul.f32 %v2535_v18, %v4806_v36  ;;  %v2538_v7 = vmul.f32 0.5, %v2490_v61  ;;  %v2493_v21 = vadd.f32 1.0, %v3593_v25 }
 0x5f5   : > { %2631 = vst [vmem:[%s4544_s27 + $0x138] sm:$0xff] %v2582_v39  ;;  %v2585_v29 = vmul.f32 %v2537_v63, %v2193_v60  ;;  %v2540_v3 = vmul.f32 0.5, %v2492_v28 }
 0x5f6   : > { %2632 = vst [vmem:[%s4544_s27 + $0x140] sm:$0xff] %v2583_v55  ;;  %v2586_v23 = vmul.f32 %v2538_v7, %v2195_v10  ;;  %v2541_v57 = vmul.f32 0.5, %v2493_v21 }
 0x5f7   : > { %2634 = vst [vmem:[%s4544_s27 + $0x150] sm:$0xff] %v2585_v29  ;;  %v2588_v33 = vmul.f32 %v2540_v3, %v2199_v6 }
 0x5f8   : > { %2635 = vst [vmem:[%s4544_s27 + $0x158] sm:$0xff] %v2586_v23  ;;  %v2589_v41 = vmul.f32 %v2541_v57, %v2201_v45 }
 0x5f9   : > { %2637 = vst [vmem:[%s4544_s27 + $0x168] sm:$0xff] %v2588_v33 }
 0x5fa   : > { %2638 = vst [vmem:[%s4544_s27 + $0x170] sm:$0xff] %v2589_v41 }
 0x5fb PF: > { %s25_s29 = sadd.s32 1, %s3619_s29  }
 0x5fc   : > { %p22_p1 = scmp.ge.s32.totalorder %s25_s29, 5  }
 0x5fe   :  { %24 = sbr.rel (!%p22_p1) target bundleno = 1 (0x1), region = 111 }
 0x605   :  { %2664 = vsyncpa [#allocation3], 1 }
 0x606   :  { %2666 = vsyncpa [#allocation3 + $0x1], 1 }

</bundles_post_ra>
